<compile_context>
chip_gen: v6e
topology: v6e:2x2x1
jax: 0.10.0
libtpu: 0.0.40
codegen_flags: <defaults>
</compile_context>

<pallas_src>
import functools

import jax
import jax.numpy as jnp
from jax.experimental import pallas as pl
from jax.experimental.pallas import tpu as pltpu

EPS = 1e-5  # torch.nn.LayerNorm default eps


def hardswish(x):
    # nn.Hardswish: x * relu6(x + 3) / 6
    return x * jnp.clip(x + 3.0, 0.0, 6.0) * (1.0 / 6.0)


def _dot(a, b):
    return jnp.dot(a, b, preferred_element_type=jnp.float32)


def _ln_grouped(x, bounds, w_row, b_row):
    # Per-branch LayerNorm((S_b, F)) on the flattened (N, SF_total) slab.
    # Each branch owns a static lane segment [lo, hi); its mean/var are
    # computed on that segment and applied via a lane-index select
    # (pure VPU work, no lane concatenation).
    n, c = x.shape
    lane = jax.lax.broadcasted_iota(jnp.int32, (n, c), 1)
    mu_full = jnp.zeros((n, c), jnp.float32)
    inv_full = jnp.zeros((n, c), jnp.float32)
    for lo, hi in bounds:
        xs = x[:, lo:hi]
        mu = jnp.mean(xs, axis=1, keepdims=True)
        d = xs - mu
        var = jnp.mean(d * d, axis=1, keepdims=True)
        inv = jax.lax.rsqrt(var + EPS)
        seg = (lane >= lo) & (lane < hi)
        mu_full = mu_full + jnp.where(seg, mu, 0.0)
        inv_full = inv_full + jnp.where(seg, inv, 0.0)
    return (x - mu_full) * inv_full * w_row + b_row


def make_fused_kernel(TF, SF_total, SH_total, D, bounds):
    # Static sublane offsets of the stacked weight slab.
    o_conv = 0
    o_w2 = o_conv + TF
    o_u1 = o_w2 + SH_total
    o_u2 = o_u1 + SF_total

    def kernel(x_ref, wbig_ref, w1_ref, fc_ref, rm_ref,
               lns_ref, m1_ref, m2_ref, rd_ref, out_ref):
        xf = x_ref[0]                                    # (N, T*F)
        rm = rm_ref[...]                                 # (7, SF_total)
        rd = rd_ref[...]                                 # (D, 2)

        # Static slices of the resident weight slab (zero-cost views).
        conv = wbig_ref[o_conv:o_conv + TF, :]           # (T*F, SF_total)
        w2 = wbig_ref[o_w2:o_w2 + SH_total, :]           # (SH_total, SF_total)
        u1 = wbig_ref[o_u1:o_u1 + SF_total, :]           # (SF_total, SF_total)
        u2 = wbig_ref[o_u2:o_u2 + SF_total, :]           # (SF_total, SF_total)

        # --- Conv1d(F,F,k,stride=k) of every branch: one matmul ---
        xt = _dot(xf, conv) + rm[0:1, :]

        # --- IndicatorMixing (all branches, block-diagonal weights) ---
        h = _ln_grouped(xt, bounds, rm[1:2, :], rm[2:3, :])
        h = _dot(hardswish(_dot(h, w1_ref[...])), w2)
        x1 = xt + h

        # --- TimeMixing (causal weighted sums, Kronecker/block-diag lifted) ---
        g = _ln_grouped(x1, bounds, rm[3:4, :], rm[4:5, :])
        u = hardswish(_dot(g, u1))
        x2 = x1 + _dot(u, u2)

        # --- per-branch fc(F,1): branch concat folded into the fc columns ---
        hm = _dot(x2, fc_ref[...]) + rm[5:6, 0:D]        # (N, D)

        # --- StockMixing: LayerNorm((N, D)) == global mean/var ---
        mu = jnp.mean(jnp.mean(hm, axis=1, keepdims=True), axis=0,
                      keepdims=True)
        d = hm - mu
        var = jnp.mean(jnp.mean(d * d, axis=1, keepdims=True), axis=0,
                       keepdims=True)
        hn = d * jax.lax.rsqrt(var + EPS) * lns_ref[0] + lns_ref[1]
        g2 = hardswish(_dot(m1_ref[...], hn))            # (market_dim, D)
        g2 = _dot(m2_ref[...], g2)                       # (N, D)

        # fc(concat([h, h+g2], dim=1)) == h @ (wa+wb) + g2 @ wb + bias
        out = _dot(hm, rd[:, 0:1]) + _dot(g2, rd[:, 1:2]) + rm[6:7, 0:1]
        out_ref[0] = out                                 # (N, 1)

    return kernel


# ----------------------------------------------------------------------------
# One-time parameter folding (host/XLA, NOT part of the per-call forward).
# ----------------------------------------------------------------------------
def _block_diag(blocks):
    R = sum(b.shape[0] for b in blocks)
    C = sum(b.shape[1] for b in blocks)
    out = jnp.zeros((R, C), jnp.float32)
    r = c = 0
    for b in blocks:
        out = out.at[r:r + b.shape[0], c:c + b.shape[1]].set(b)
        r += b.shape[0]
        c += b.shape[1]
    return out


def fold_params(branch_params, stock_params, scale_factors, T, F, H):
    D = sum(T // k for k in scale_factors)
    eye_F = jnp.eye(F, dtype=jnp.float32)

    conv_b, w1_b, w2_b, u1_b, u2_b, fc_b = [], [], [], [], [], []
    r_cb, r_l1w, r_l1b, r_l2w, r_l2b = [], [], [], [], []
    bias_parts, sf_sizes = [], []

    for k, p in zip(scale_factors, branch_params):
        S = T // k
        eye_S = jnp.eye(S, dtype=jnp.float32)
        conv_b.append(jnp.kron(eye_S, p['w_conv']))       # (T*F, S*F)
        w1_b.append(jnp.kron(eye_S, p['W1']))             # (S*F, S*H)
        w2_b.append(jnp.kron(eye_S, p['W2']))             # (S*H, S*F)
        u1_b.append(jnp.kron(p['U1'].T, eye_F))           # (S*F, S*F)
        u2_b.append(jnp.kron(p['U2'].T, eye_F))
        fc_b.append(jnp.kron(eye_S, p['fc_w']))           # (S*F, S)
        r_cb.append(jnp.tile(p['b_conv'][0], S))
        r_l1w.append(p['ln1_w'].reshape(-1))
        r_l1b.append(p['ln1_b'].reshape(-1))
        r_l2w.append(p['ln2_w'].reshape(-1))
        r_l2b.append(p['ln2_b'].reshape(-1))
        bias_parts.append(jnp.full((S,), p['fc_b'][0, 0], jnp.float32))
        sf_sizes.append(S * F)

    SF_total = sum(sf_sizes)
    conv_comb = jnp.concatenate(conv_b, axis=1)           # (T*F, SF_total)
    w1_comb = _block_diag(w1_b)                           # (SF_total, SH_total)
    w2_comb = _block_diag(w2_b)                           # (SH_total, SF_total)
    u1_comb = _block_diag(u1_b)                           # (SF_total, SF_total)
    u2_comb = _block_diag(u2_b)
    fc_comb = _block_diag(fc_b)                           # (SF_total, D)

    # One sublane-stacked slab for every matrix whose trailing dim is SF_total.
    W_big = jnp.concatenate([conv_comb, w2_comb, u1_comb, u2_comb], axis=0)

    sp = stock_params
    branch_bias = jnp.concatenate(bias_parts)             # (D,)
    row5 = jnp.zeros((SF_total,), jnp.float32).at[:D].set(branch_bias)
    row6 = jnp.zeros((SF_total,), jnp.float32).at[0].set(sp['fc_b'][0, 0])
    rowsm = jnp.stack([jnp.concatenate(r_cb), jnp.concatenate(r_l1w),
                       jnp.concatenate(r_l1b), jnp.concatenate(r_l2w),
                       jnp.concatenate(r_l2b), row5, row6], axis=0)

    ln_s = jnp.stack([sp['ln_w'], sp['ln_b']], axis=0)    # (2, N, D)
    rd = jnp.stack([sp['fc_wa'][:, 0] + sp['fc_wb'][:, 0],
                    sp['fc_wb'][:, 0]], axis=1)           # (D, 2)

    weights = (W_big, w1_comb, fc_comb, rowsm, ln_s, sp['M1'], sp['M2'], rd)
    return weights, tuple(sf_sizes)


# ----------------------------------------------------------------------------
# Fused, batched forward (single pallas_call, grid over the batch)
# ----------------------------------------------------------------------------
def stockmixer_forward(xb, weights, *, branch_sf_sizes):
    W_big, W1_blk, fc_blk, rowsm, ln_s, M1, M2, rd = weights
    B, N, T, F = xb.shape
    TF = T * F
    SF_total = W1_blk.shape[0]
    SH_total = W1_blk.shape[1]
    D = fc_blk.shape[1]

    bounds, off = [], 0
    for s in branch_sf_sizes:
        bounds.append((off, off + s))
        off += s

    x_flat = xb.reshape(B, N, TF)                         # lane-dense (…,128)
    kernel = make_fused_kernel(TF, SF_total, SH_total, D, tuple(bounds))

    def const_spec(shape):
        nd = len(shape)
        return pl.BlockSpec(shape, lambda b, _n=nd: (0,) * _n)

    return pl.pallas_call(
        kernel,
        grid=(B,),
        in_specs=[pl.BlockSpec((1, N, TF), lambda b: (b, 0, 0)),
                  const_spec(W_big.shape), const_spec(W1_blk.shape),
                  const_spec(fc_blk.shape), const_spec(rowsm.shape),
                  const_spec(ln_s.shape), const_spec(M1.shape),
                  const_spec(M2.shape), const_spec(rd.shape)],
        out_specs=pl.BlockSpec((1, N, 1), lambda b: (b, 0, 0)),
        out_shape=jax.ShapeDtypeStruct((B, N, 1), jnp.float32),
        compiler_params=pltpu.CompilerParams(
            dimension_semantics=("parallel",)),   # 2nd TensorCore on v7x
    )(x_flat, W_big, W1_blk, fc_blk, rowsm, ln_s, M1, M2, rd)


# ----------------------------------------------------------------------------
# Parameter init (deterministic, synthetic) + pure-JAX reference
# ----------------------------------------------------------------------------
def init_params(key, F, T, H, market_dim, N, scale_factors):
    branches = []
    keys = jax.random.split(key, len(scale_factors) + 1)
    for k, bk in zip(scale_factors, keys[:-1]):
        S = T // k
        ks = jax.random.split(bk, 8)
        W_c = jax.random.normal(ks[0], (F, F, k), jnp.float32) / jnp.sqrt(F * k)
        b_c = jax.random.normal(ks[1], (F,), jnp.float32) * 0.1
        # w_conv[j*F + c, o] == W_c[o, c, j]
        w_conv = jnp.transpose(W_c, (2, 1, 0)).reshape(k * F, F)
        branches.append(dict(
            w_conv=w_conv, b_conv=b_c.reshape(1, F),
            ln1_w=jnp.ones((S, F), jnp.float32), ln1_b=jnp.zeros((S, F), jnp.float32),
            W1=jax.random.normal(ks[2], (F, H), jnp.float32),
            W2=jax.random.normal(ks[3], (H, F), jnp.float32),
            ln2_w=jnp.ones((S, F), jnp.float32), ln2_b=jnp.zeros((S, F), jnp.float32),
            U1=jnp.tril(jax.random.normal(ks[4], (S, S), jnp.float32) * 0.01),
            U2=jnp.tril(jax.random.normal(ks[5], (S, S), jnp.float32) * 0.01),
            fc_w=jax.random.normal(ks[6], (F, 1), jnp.float32) / jnp.sqrt(F),
            fc_b=jax.random.normal(ks[7], (1, 1), jnp.float32) * 0.1,
        ))
    mix_dim = sum(T // k for k in scale_factors)
    sk = jax.random.split(keys[-1], 4)
    fc_w = jax.random.normal(sk[2], (2 * mix_dim, 1), jnp.float32) / jnp.sqrt(2 * mix_dim)
    stock = dict(
        ln_w=jnp.ones((N, mix_dim), jnp.float32),
        ln_b=jnp.zeros((N, mix_dim), jnp.float32),
        M1=jax.random.normal(sk[0], (market_dim, N), jnp.float32),
        M2=jax.random.normal(sk[1], (N, market_dim), jnp.float32),
        fc_wa=fc_w[:mix_dim], fc_wb=fc_w[mix_dim:],
        fc_b=jax.random.normal(sk[3], (1, 1), jnp.float32) * 0.1,
    )
    return branches, stock


def ref_forward(x, branch_params, stock_params, scale_factors):
    # Pure-JAX reference of the PyTorch forward pass (single sample).
    with jax.default_matmul_precision("highest"):
        N, T, F = x.shape
        outs = []

        def ln2d(a, w, b):
            mu = a.mean(axis=(1, 2), keepdims=True)
            var = ((a - mu) ** 2).mean(axis=(1, 2), keepdims=True)
            return (a - mu) / jnp.sqrt(var + EPS) * w + b

        for k, p in zip(scale_factors, branch_params):
            S = T // k
            xr = x.reshape(N, S, k * F)
            xt = xr @ p['w_conv'] + p['b_conv']
            h = ln2d(xt, p['ln1_w'], p['ln1_b'])
            h = hardswish(h @ p['W1']) @ p['W2']
            x1 = xt + h
            h2 = ln2d(x1, p['ln2_w'], p['ln2_b'])
            u = hardswish(jnp.einsum('st,ntf->nsf', p['U1'], h2))
            v = jnp.einsum('st,ntf->nsf', p['U2'], u)
            x2 = x1 + v
            outs.append((x2 @ p['fc_w'])[..., 0] + p['fc_b'][0, 0])

        hcat = jnp.concatenate(outs, axis=1)
        sp = stock_params
        mu = hcat.mean()
        var = ((hcat - mu) ** 2).mean()
        hn = (hcat - mu) / jnp.sqrt(var + EPS) * sp['ln_w'] + sp['ln_b']
        g = hardswish(sp['M1'] @ hn)
        g = sp['M2'] @ g
        res = hcat + g
        return hcat @ sp['fc_wa'] + res @ sp['fc_wb'] + sp['fc_b']


if __name__ == "__main__":
    feature_dim, seq_len, hidden_dim = 16, 8, 32
    market_dim, stock_num = 4, 32
    scale_factors = [1, 2]                  # mix_dim = 8 + 4 = 12
    batch = 4                               # batch grid amortizes weight DMAs

    key = jax.random.PRNGKey(0)
    kx, kp = jax.random.split(key)
    xb = jax.random.normal(kx, (batch, stock_num, seq_len, feature_dim),
                           jnp.float32)
    branch_params, stock_params = init_params(
        kp, feature_dim, seq_len, hidden_dim, market_dim, stock_num,
        scale_factors)

    # One-time weight folding + branch merging (Kronecker / block-diagonal).
    weights, sf_sizes = fold_params(branch_params, stock_params, scale_factors,
                                    seq_len, feature_dim, hidden_dim)

    fwd = jax.jit(functools.partial(stockmixer_forward,
                                    branch_sf_sizes=sf_sizes))
    out = jax.block_until_ready(fwd(xb, weights))

    ref = jnp.stack([ref_forward(xb[b], branch_params, stock_params,
                                 scale_factors) for b in range(batch)], axis=0)
    assert out.shape == (batch, stock_num, 1), out.shape
    err = float(jnp.max(jnp.abs(out - ref)))
    tol = 1e-2 * (1.0 + float(jnp.max(jnp.abs(ref))))
    if not bool(jnp.all(jnp.isfinite(out))) or err > tol:
        raise AssertionError(f"mismatch: max abs err {err} (tol {tol})")
    print("KERNEL_OK")
</pallas_src>

<mosaic_0001>
module attributes {stable_mosaic.version = 11 : i64} {
  func.func @kernel(%arg0: i32, %arg1: memref<1x32x128xf32, #tpu.memory_space<vmem>>, %arg2: memref<896x192xf32, #tpu.memory_space<vmem>>, %arg3: memref<192x384xf32, #tpu.memory_space<vmem>>, %arg4: memref<192x12xf32, #tpu.memory_space<vmem>>, %arg5: memref<7x192xf32, #tpu.memory_space<vmem>>, %arg6: memref<2x32x12xf32, #tpu.memory_space<vmem>>, %arg7: memref<4x32xf32, #tpu.memory_space<vmem>>, %arg8: memref<32x4xf32, #tpu.memory_space<vmem>>, %arg9: memref<12x2xf32, #tpu.memory_space<vmem>>, %arg10: memref<1x32x1xf32, #tpu.memory_space<vmem>>) attributes {dimension_semantics = [#tpu.dimension_semantics<parallel>], iteration_bounds = array<i64: 4>, scalar_prefetch = 0 : i64, scratch_operands = 0 : i64, tpu.core_type = #tpu.core_type<tc>, window_params = [{transform_indices = @transform_0, window_bounds = array<i64: 1, 32, 128>}, {pipeline_mode = #tpu.pipeline_mode<synchronous>, transform_indices = @transform_1, window_bounds = array<i64: 896, 192>}, {pipeline_mode = #tpu.pipeline_mode<synchronous>, transform_indices = @transform_2, window_bounds = array<i64: 192, 384>}, {pipeline_mode = #tpu.pipeline_mode<synchronous>, transform_indices = @transform_3, window_bounds = array<i64: 192, 12>}, {pipeline_mode = #tpu.pipeline_mode<synchronous>, transform_indices = @transform_4, window_bounds = array<i64: 7, 192>}, {pipeline_mode = #tpu.pipeline_mode<synchronous>, transform_indices = @transform_5, window_bounds = array<i64: 2, 32, 12>}, {pipeline_mode = #tpu.pipeline_mode<synchronous>, transform_indices = @transform_6, window_bounds = array<i64: 4, 32>}, {pipeline_mode = #tpu.pipeline_mode<synchronous>, transform_indices = @transform_7, window_bounds = array<i64: 32, 4>}, {pipeline_mode = #tpu.pipeline_mode<synchronous>, transform_indices = @transform_8, window_bounds = array<i64: 12, 2>}, {transform_indices = @transform_9, window_bounds = array<i64: 1, 32, 1>}]} {
    %c0 = arith.constant 0 : index
    %c0_0 = arith.constant 0 : index
    %c0_1 = arith.constant 0 : index
    %0 = vector.load %arg1[%c0, %c0_0, %c0_1] : memref<1x32x128xf32, #tpu.memory_space<vmem>>, vector<1x32x128xf32>
    %1 = vector.shape_cast %0 : vector<1x32x128xf32> to vector<32x128xf32>
    %c0_2 = arith.constant 0 : index
    %c0_3 = arith.constant 0 : index
    %2 = vector.load %arg5[%c0_2, %c0_3] : memref<7x192xf32, #tpu.memory_space<vmem>>, vector<7x192xf32>
    %c0_4 = arith.constant 0 : index
    %c0_5 = arith.constant 0 : index
    %3 = vector.load %arg9[%c0_4, %c0_5] : memref<12x2xf32, #tpu.memory_space<vmem>>, vector<12x2xf32>
    %c0_6 = arith.constant 0 : index
    %c0_7 = arith.constant 0 : index
    %4 = vector.load %arg2[%c0_6, %c0_7] : memref<896x192xf32, #tpu.memory_space<vmem>>, vector<128x192xf32>
    %c128 = arith.constant 128 : index
    %c0_8 = arith.constant 0 : index
    %5 = vector.load %arg2[%c128, %c0_8] : memref<896x192xf32, #tpu.memory_space<vmem>>, vector<384x192xf32>
    %c512 = arith.constant 512 : index
    %c0_9 = arith.constant 0 : index
    %6 = vector.load %arg2[%c512, %c0_9] : memref<896x192xf32, #tpu.memory_space<vmem>>, vector<192x192xf32>
    %c704 = arith.constant 704 : index
    %c0_10 = arith.constant 0 : index
    %7 = vector.load %arg2[%c704, %c0_10] : memref<896x192xf32, #tpu.memory_space<vmem>>, vector<192x192xf32>
    %cst = arith.constant dense<0.000000e+00> : vector<32x192xf32>
    %8 = tpu.matmul %1, %4, %cst {dimension_numbers = #tpu.dot_dimension_numbers<[1], [0], [0], [1], [0, 0, 1, 1], [], []>} : vector<32x128xf32>, vector<128x192xf32>, vector<32x192xf32> -> vector<32x192xf32>
    %9 = vector.extract_strided_slice %2 {offsets = [0, 0], sizes = [1, 192], strides = [1, 1]} : vector<7x192xf32> to vector<1x192xf32>
    %10 = vector.broadcast %9 : vector<1x192xf32> to vector<32x192xf32>
    %11 = arith.addf %8, %10 : vector<32x192xf32>
    %12 = vector.extract_strided_slice %2 {offsets = [1, 0], sizes = [1, 192], strides = [1, 1]} : vector<7x192xf32> to vector<1x192xf32>
    %13 = vector.extract_strided_slice %2 {offsets = [2, 0], sizes = [1, 192], strides = [1, 1]} : vector<7x192xf32> to vector<1x192xf32>
    %14 = tpu.iota {dimensions = array<i32: 1>} : vector<32x192xi32>
    %cst_11 = arith.constant 0.000000e+00 : f32
    %15 = vector.broadcast %cst_11 : f32 to vector<32x192xf32>
    %cst_12 = arith.constant 0.000000e+00 : f32
    %16 = vector.broadcast %cst_12 : f32 to vector<32x192xf32>
    %17 = vector.extract_strided_slice %11 {offsets = [0, 0], sizes = [32, 128], strides = [1, 1]} : vector<32x192xf32> to vector<32x128xf32>
    %cst_13 = arith.constant dense<0.000000e+00> : vector<32xf32>
    %18 = vector.multi_reduction <add>, %17, %cst_13 [1] : vector<32x128xf32> to vector<32xf32>
    %19 = vector.shape_cast %18 : vector<32xf32> to vector<32x1xf32>
    %cst_14 = arith.constant 1.280000e+02 : f32
    %20 = vector.broadcast %cst_14 : f32 to vector<32x1xf32>
    %21 = arith.divf %19, %20 : vector<32x1xf32>
    %22 = vector.broadcast %21 : vector<32x1xf32> to vector<32x128xf32>
    %23 = arith.subf %17, %22 : vector<32x128xf32>
    %24 = arith.mulf %23, %23 : vector<32x128xf32>
    %cst_15 = arith.constant dense<0.000000e+00> : vector<32xf32>
    %25 = vector.multi_reduction <add>, %24, %cst_15 [1] : vector<32x128xf32> to vector<32xf32>
    %26 = vector.shape_cast %25 : vector<32xf32> to vector<32x1xf32>
    %cst_16 = arith.constant 1.280000e+02 : f32
    %27 = vector.broadcast %cst_16 : f32 to vector<32x1xf32>
    %28 = arith.divf %26, %27 : vector<32x1xf32>
    %cst_17 = arith.constant 9.99999974E-6 : f32
    %29 = vector.broadcast %cst_17 : f32 to vector<32x1xf32>
    %30 = arith.addf %28, %29 : vector<32x1xf32>
    %31 = math.rsqrt %30 : vector<32x1xf32>
    %c0_i32 = arith.constant 0 : i32
    %32 = vector.broadcast %c0_i32 : i32 to vector<32x192xi32>
    %33 = arith.cmpi sge, %14, %32 : vector<32x192xi32>
    %c128_i32 = arith.constant 128 : i32
    %34 = vector.broadcast %c128_i32 : i32 to vector<32x192xi32>
    %35 = arith.cmpi slt, %14, %34 : vector<32x192xi32>
    %36 = arith.andi %33, %35 : vector<32x192xi1>
    %cst_18 = arith.constant 0.000000e+00 : f32
    %37 = vector.shape_cast %21 : vector<32x1xf32> to vector<32x1xf32>
    %38 = vector.broadcast %37 : vector<32x1xf32> to vector<32x192xf32>
    %39 = vector.broadcast %cst_18 : f32 to vector<32x192xf32>
    %40 = arith.select %36, %38, %39 : vector<32x192xi1>, vector<32x192xf32>
    %41 = arith.addf %15, %40 : vector<32x192xf32>
    %cst_19 = arith.constant 0.000000e+00 : f32
    %42 = vector.shape_cast %31 : vector<32x1xf32> to vector<32x1xf32>
    %43 = vector.broadcast %42 : vector<32x1xf32> to vector<32x192xf32>
    %44 = vector.broadcast %cst_19 : f32 to vector<32x192xf32>
    %45 = arith.select %36, %43, %44 : vector<32x192xi1>, vector<32x192xf32>
    %46 = arith.addf %16, %45 : vector<32x192xf32>
    %47 = vector.extract_strided_slice %11 {offsets = [0, 128], sizes = [32, 64], strides = [1, 1]} : vector<32x192xf32> to vector<32x64xf32>
    %cst_20 = arith.constant dense<0.000000e+00> : vector<32xf32>
    %48 = vector.multi_reduction <add>, %47, %cst_20 [1] : vector<32x64xf32> to vector<32xf32>
    %49 = vector.shape_cast %48 : vector<32xf32> to vector<32x1xf32>
    %cst_21 = arith.constant 6.400000e+01 : f32
    %50 = vector.broadcast %cst_21 : f32 to vector<32x1xf32>
    %51 = arith.divf %49, %50 : vector<32x1xf32>
    %52 = vector.broadcast %51 : vector<32x1xf32> to vector<32x64xf32>
    %53 = arith.subf %47, %52 : vector<32x64xf32>
    %54 = arith.mulf %53, %53 : vector<32x64xf32>
    %cst_22 = arith.constant dense<0.000000e+00> : vector<32xf32>
    %55 = vector.multi_reduction <add>, %54, %cst_22 [1] : vector<32x64xf32> to vector<32xf32>
    %56 = vector.shape_cast %55 : vector<32xf32> to vector<32x1xf32>
    %cst_23 = arith.constant 6.400000e+01 : f32
    %57 = vector.broadcast %cst_23 : f32 to vector<32x1xf32>
    %58 = arith.divf %56, %57 : vector<32x1xf32>
    %cst_24 = arith.constant 9.99999974E-6 : f32
    %59 = vector.broadcast %cst_24 : f32 to vector<32x1xf32>
    %60 = arith.addf %58, %59 : vector<32x1xf32>
    %61 = math.rsqrt %60 : vector<32x1xf32>
    %c128_i32_25 = arith.constant 128 : i32
    %62 = vector.broadcast %c128_i32_25 : i32 to vector<32x192xi32>
    %63 = arith.cmpi sge, %14, %62 : vector<32x192xi32>
    %c192_i32 = arith.constant 192 : i32
    %64 = vector.broadcast %c192_i32 : i32 to vector<32x192xi32>
    %65 = arith.cmpi slt, %14, %64 : vector<32x192xi32>
    %66 = arith.andi %63, %65 : vector<32x192xi1>
    %cst_26 = arith.constant 0.000000e+00 : f32
    %67 = vector.shape_cast %51 : vector<32x1xf32> to vector<32x1xf32>
    %68 = vector.broadcast %67 : vector<32x1xf32> to vector<32x192xf32>
    %69 = vector.broadcast %cst_26 : f32 to vector<32x192xf32>
    %70 = arith.select %66, %68, %69 : vector<32x192xi1>, vector<32x192xf32>
    %71 = arith.addf %41, %70 : vector<32x192xf32>
    %cst_27 = arith.constant 0.000000e+00 : f32
    %72 = vector.shape_cast %61 : vector<32x1xf32> to vector<32x1xf32>
    %73 = vector.broadcast %72 : vector<32x1xf32> to vector<32x192xf32>
    %74 = vector.broadcast %cst_27 : f32 to vector<32x192xf32>
    %75 = arith.select %66, %73, %74 : vector<32x192xi1>, vector<32x192xf32>
    %76 = arith.addf %46, %75 : vector<32x192xf32>
    %77 = arith.subf %11, %71 : vector<32x192xf32>
    %78 = arith.mulf %77, %76 : vector<32x192xf32>
    %79 = vector.broadcast %12 : vector<1x192xf32> to vector<32x192xf32>
    %80 = arith.mulf %78, %79 : vector<32x192xf32>
    %81 = vector.broadcast %13 : vector<1x192xf32> to vector<32x192xf32>
    %82 = arith.addf %80, %81 : vector<32x192xf32>
    %c0_28 = arith.constant 0 : index
    %c0_29 = arith.constant 0 : index
    %83 = vector.load %arg3[%c0_28, %c0_29] : memref<192x384xf32, #tpu.memory_space<vmem>>, vector<192x384xf32>
    %cst_30 = arith.constant dense<0.000000e+00> : vector<32x384xf32>
    %84 = tpu.matmul %82, %83, %cst_30 {dimension_numbers = #tpu.dot_dimension_numbers<[1], [0], [0], [1], [0, 0, 1, 1], [], []>} : vector<32x192xf32>, vector<192x384xf32>, vector<32x384xf32> -> vector<32x384xf32>
    %cst_31 = arith.constant 3.000000e+00 : f32
    %85 = vector.broadcast %cst_31 : f32 to vector<32x384xf32>
    %86 = arith.addf %84, %85 : vector<32x384xf32>
    %cst_32 = arith.constant 0.000000e+00 : f32
    %cst_33 = arith.constant 6.000000e+00 : f32
    %87 = vector.broadcast %cst_32 : f32 to vector<32x384xf32>
    %88 = arith.maximumf %87, %86 : vector<32x384xf32>
    %89 = vector.broadcast %cst_33 : f32 to vector<32x384xf32>
    %90 = arith.minimumf %89, %88 : vector<32x384xf32>
    %91 = arith.mulf %84, %90 : vector<32x384xf32>
    %cst_34 = arith.constant 0.166666672 : f32
    %92 = vector.broadcast %cst_34 : f32 to vector<32x384xf32>
    %93 = arith.mulf %91, %92 : vector<32x384xf32>
    %cst_35 = arith.constant dense<0.000000e+00> : vector<32x192xf32>
    %94 = tpu.matmul %93, %5, %cst_35 {dimension_numbers = #tpu.dot_dimension_numbers<[1], [0], [0], [1], [0, 0, 1, 1], [], []>} : vector<32x384xf32>, vector<384x192xf32>, vector<32x192xf32> -> vector<32x192xf32>
    %95 = arith.addf %11, %94 : vector<32x192xf32>
    %96 = vector.extract_strided_slice %2 {offsets = [3, 0], sizes = [1, 192], strides = [1, 1]} : vector<7x192xf32> to vector<1x192xf32>
    %97 = vector.extract_strided_slice %2 {offsets = [4, 0], sizes = [1, 192], strides = [1, 1]} : vector<7x192xf32> to vector<1x192xf32>
    %98 = tpu.iota {dimensions = array<i32: 1>} : vector<32x192xi32>
    %cst_36 = arith.constant 0.000000e+00 : f32
    %99 = vector.broadcast %cst_36 : f32 to vector<32x192xf32>
    %cst_37 = arith.constant 0.000000e+00 : f32
    %100 = vector.broadcast %cst_37 : f32 to vector<32x192xf32>
    %101 = vector.extract_strided_slice %95 {offsets = [0, 0], sizes = [32, 128], strides = [1, 1]} : vector<32x192xf32> to vector<32x128xf32>
    %cst_38 = arith.constant dense<0.000000e+00> : vector<32xf32>
    %102 = vector.multi_reduction <add>, %101, %cst_38 [1] : vector<32x128xf32> to vector<32xf32>
    %103 = vector.shape_cast %102 : vector<32xf32> to vector<32x1xf32>
    %cst_39 = arith.constant 1.280000e+02 : f32
    %104 = vector.broadcast %cst_39 : f32 to vector<32x1xf32>
    %105 = arith.divf %103, %104 : vector<32x1xf32>
    %106 = vector.broadcast %105 : vector<32x1xf32> to vector<32x128xf32>
    %107 = arith.subf %101, %106 : vector<32x128xf32>
    %108 = arith.mulf %107, %107 : vector<32x128xf32>
    %cst_40 = arith.constant dense<0.000000e+00> : vector<32xf32>
    %109 = vector.multi_reduction <add>, %108, %cst_40 [1] : vector<32x128xf32> to vector<32xf32>
    %110 = vector.shape_cast %109 : vector<32xf32> to vector<32x1xf32>
    %cst_41 = arith.constant 1.280000e+02 : f32
    %111 = vector.broadcast %cst_41 : f32 to vector<32x1xf32>
    %112 = arith.divf %110, %111 : vector<32x1xf32>
    %cst_42 = arith.constant 9.99999974E-6 : f32
    %113 = vector.broadcast %cst_42 : f32 to vector<32x1xf32>
    %114 = arith.addf %112, %113 : vector<32x1xf32>
    %115 = math.rsqrt %114 : vector<32x1xf32>
    %c0_i32_43 = arith.constant 0 : i32
    %116 = vector.broadcast %c0_i32_43 : i32 to vector<32x192xi32>
    %117 = arith.cmpi sge, %98, %116 : vector<32x192xi32>
    %c128_i32_44 = arith.constant 128 : i32
    %118 = vector.broadcast %c128_i32_44 : i32 to vector<32x192xi32>
    %119 = arith.cmpi slt, %98, %118 : vector<32x192xi32>
    %120 = arith.andi %117, %119 : vector<32x192xi1>
    %cst_45 = arith.constant 0.000000e+00 : f32
    %121 = vector.shape_cast %105 : vector<32x1xf32> to vector<32x1xf32>
    %122 = vector.broadcast %121 : vector<32x1xf32> to vector<32x192xf32>
    %123 = vector.broadcast %cst_45 : f32 to vector<32x192xf32>
    %124 = arith.select %120, %122, %123 : vector<32x192xi1>, vector<32x192xf32>
    %125 = arith.addf %99, %124 : vector<32x192xf32>
    %cst_46 = arith.constant 0.000000e+00 : f32
    %126 = vector.shape_cast %115 : vector<32x1xf32> to vector<32x1xf32>
    %127 = vector.broadcast %126 : vector<32x1xf32> to vector<32x192xf32>
    %128 = vector.broadcast %cst_46 : f32 to vector<32x192xf32>
    %129 = arith.select %120, %127, %128 : vector<32x192xi1>, vector<32x192xf32>
    %130 = arith.addf %100, %129 : vector<32x192xf32>
    %131 = vector.extract_strided_slice %95 {offsets = [0, 128], sizes = [32, 64], strides = [1, 1]} : vector<32x192xf32> to vector<32x64xf32>
    %cst_47 = arith.constant dense<0.000000e+00> : vector<32xf32>
    %132 = vector.multi_reduction <add>, %131, %cst_47 [1] : vector<32x64xf32> to vector<32xf32>
    %133 = vector.shape_cast %132 : vector<32xf32> to vector<32x1xf32>
    %cst_48 = arith.constant 6.400000e+01 : f32
    %134 = vector.broadcast %cst_48 : f32 to vector<32x1xf32>
    %135 = arith.divf %133, %134 : vector<32x1xf32>
    %136 = vector.broadcast %135 : vector<32x1xf32> to vector<32x64xf32>
    %137 = arith.subf %131, %136 : vector<32x64xf32>
    %138 = arith.mulf %137, %137 : vector<32x64xf32>
    %cst_49 = arith.constant dense<0.000000e+00> : vector<32xf32>
    %139 = vector.multi_reduction <add>, %138, %cst_49 [1] : vector<32x64xf32> to vector<32xf32>
    %140 = vector.shape_cast %139 : vector<32xf32> to vector<32x1xf32>
    %cst_50 = arith.constant 6.400000e+01 : f32
    %141 = vector.broadcast %cst_50 : f32 to vector<32x1xf32>
    %142 = arith.divf %140, %141 : vector<32x1xf32>
    %cst_51 = arith.constant 9.99999974E-6 : f32
    %143 = vector.broadcast %cst_51 : f32 to vector<32x1xf32>
    %144 = arith.addf %142, %143 : vector<32x1xf32>
    %145 = math.rsqrt %144 : vector<32x1xf32>
    %c128_i32_52 = arith.constant 128 : i32
    %146 = vector.broadcast %c128_i32_52 : i32 to vector<32x192xi32>
    %147 = arith.cmpi sge, %98, %146 : vector<32x192xi32>
    %c192_i32_53 = arith.constant 192 : i32
    %148 = vector.broadcast %c192_i32_53 : i32 to vector<32x192xi32>
    %149 = arith.cmpi slt, %98, %148 : vector<32x192xi32>
    %150 = arith.andi %147, %149 : vector<32x192xi1>
    %cst_54 = arith.constant 0.000000e+00 : f32
    %151 = vector.shape_cast %135 : vector<32x1xf32> to vector<32x1xf32>
    %152 = vector.broadcast %151 : vector<32x1xf32> to vector<32x192xf32>
    %153 = vector.broadcast %cst_54 : f32 to vector<32x192xf32>
    %154 = arith.select %150, %152, %153 : vector<32x192xi1>, vector<32x192xf32>
    %155 = arith.addf %125, %154 : vector<32x192xf32>
    %cst_55 = arith.constant 0.000000e+00 : f32
    %156 = vector.shape_cast %145 : vector<32x1xf32> to vector<32x1xf32>
    %157 = vector.broadcast %156 : vector<32x1xf32> to vector<32x192xf32>
    %158 = vector.broadcast %cst_55 : f32 to vector<32x192xf32>
    %159 = arith.select %150, %157, %158 : vector<32x192xi1>, vector<32x192xf32>
    %160 = arith.addf %130, %159 : vector<32x192xf32>
    %161 = arith.subf %95, %155 : vector<32x192xf32>
    %162 = arith.mulf %161, %160 : vector<32x192xf32>
    %163 = vector.broadcast %96 : vector<1x192xf32> to vector<32x192xf32>
    %164 = arith.mulf %162, %163 : vector<32x192xf32>
    %165 = vector.broadcast %97 : vector<1x192xf32> to vector<32x192xf32>
    %166 = arith.addf %164, %165 : vector<32x192xf32>
    %cst_56 = arith.constant dense<0.000000e+00> : vector<32x192xf32>
    %167 = tpu.matmul %166, %6, %cst_56 {dimension_numbers = #tpu.dot_dimension_numbers<[1], [0], [0], [1], [0, 0, 1, 1], [], []>} : vector<32x192xf32>, vector<192x192xf32>, vector<32x192xf32> -> vector<32x192xf32>
    %cst_57 = arith.constant 3.000000e+00 : f32
    %168 = vector.broadcast %cst_57 : f32 to vector<32x192xf32>
    %169 = arith.addf %167, %168 : vector<32x192xf32>
    %cst_58 = arith.constant 0.000000e+00 : f32
    %cst_59 = arith.constant 6.000000e+00 : f32
    %170 = vector.broadcast %cst_58 : f32 to vector<32x192xf32>
    %171 = arith.maximumf %170, %169 : vector<32x192xf32>
    %172 = vector.broadcast %cst_59 : f32 to vector<32x192xf32>
    %173 = arith.minimumf %172, %171 : vector<32x192xf32>
    %174 = arith.mulf %167, %173 : vector<32x192xf32>
    %cst_60 = arith.constant 0.166666672 : f32
    %175 = vector.broadcast %cst_60 : f32 to vector<32x192xf32>
    %176 = arith.mulf %174, %175 : vector<32x192xf32>
    %cst_61 = arith.constant dense<0.000000e+00> : vector<32x192xf32>
    %177 = tpu.matmul %176, %7, %cst_61 {dimension_numbers = #tpu.dot_dimension_numbers<[1], [0], [0], [1], [0, 0, 1, 1], [], []>} : vector<32x192xf32>, vector<192x192xf32>, vector<32x192xf32> -> vector<32x192xf32>
    %178 = arith.addf %95, %177 : vector<32x192xf32>
    %c0_62 = arith.constant 0 : index
    %c0_63 = arith.constant 0 : index
    %179 = vector.load %arg4[%c0_62, %c0_63] : memref<192x12xf32, #tpu.memory_space<vmem>>, vector<192x12xf32>
    %cst_64 = arith.constant dense<0.000000e+00> : vector<32x12xf32>
    %180 = tpu.matmul %178, %179, %cst_64 {dimension_numbers = #tpu.dot_dimension_numbers<[1], [0], [0], [1], [0, 0, 1, 1], [], []>} : vector<32x192xf32>, vector<192x12xf32>, vector<32x12xf32> -> vector<32x12xf32>
    %181 = vector.extract_strided_slice %2 {offsets = [5, 0], sizes = [1, 12], strides = [1, 1]} : vector<7x192xf32> to vector<1x12xf32>
    %182 = vector.broadcast %181 : vector<1x12xf32> to vector<32x12xf32>
    %183 = arith.addf %180, %182 : vector<32x12xf32>
    %cst_65 = arith.constant dense<0.000000e+00> : vector<32xf32>
    %184 = vector.multi_reduction <add>, %183, %cst_65 [1] : vector<32x12xf32> to vector<32xf32>
    %185 = vector.shape_cast %184 : vector<32xf32> to vector<32x1xf32>
    %cst_66 = arith.constant 1.200000e+01 : f32
    %186 = vector.broadcast %cst_66 : f32 to vector<32x1xf32>
    %187 = arith.divf %185, %186 : vector<32x1xf32>
    %cst_67 = arith.constant dense<0.000000e+00> : vector<1xf32>
    %188 = vector.multi_reduction <add>, %187, %cst_67 [0] : vector<32x1xf32> to vector<1xf32>
    %189 = vector.shape_cast %188 : vector<1xf32> to vector<1x1xf32>
    %cst_68 = arith.constant 3.200000e+01 : f32
    %190 = vector.broadcast %cst_68 : f32 to vector<1x1xf32>
    %191 = arith.divf %189, %190 : vector<1x1xf32>
    %192 = vector.broadcast %191 : vector<1x1xf32> to vector<32x12xf32>
    %193 = arith.subf %183, %192 : vector<32x12xf32>
    %194 = arith.mulf %193, %193 : vector<32x12xf32>
    %cst_69 = arith.constant dense<0.000000e+00> : vector<32xf32>
    %195 = vector.multi_reduction <add>, %194, %cst_69 [1] : vector<32x12xf32> to vector<32xf32>
    %196 = vector.shape_cast %195 : vector<32xf32> to vector<32x1xf32>
    %cst_70 = arith.constant 1.200000e+01 : f32
    %197 = vector.broadcast %cst_70 : f32 to vector<32x1xf32>
    %198 = arith.divf %196, %197 : vector<32x1xf32>
    %cst_71 = arith.constant dense<0.000000e+00> : vector<1xf32>
    %199 = vector.multi_reduction <add>, %198, %cst_71 [0] : vector<32x1xf32> to vector<1xf32>
    %200 = vector.shape_cast %199 : vector<1xf32> to vector<1x1xf32>
    %cst_72 = arith.constant 3.200000e+01 : f32
    %201 = vector.broadcast %cst_72 : f32 to vector<1x1xf32>
    %202 = arith.divf %200, %201 : vector<1x1xf32>
    %cst_73 = arith.constant 9.99999974E-6 : f32
    %203 = vector.broadcast %cst_73 : f32 to vector<1x1xf32>
    %204 = arith.addf %202, %203 : vector<1x1xf32>
    %205 = math.rsqrt %204 : vector<1x1xf32>
    %206 = vector.broadcast %205 : vector<1x1xf32> to vector<32x12xf32>
    %207 = arith.mulf %193, %206 : vector<32x12xf32>
    %c0_74 = arith.constant 0 : index
    %c0_75 = arith.constant 0 : index
    %c0_76 = arith.constant 0 : index
    %208 = vector.load %arg6[%c0_74, %c0_75, %c0_76] : memref<2x32x12xf32, #tpu.memory_space<vmem>>, vector<1x32x12xf32>
    %209 = vector.shape_cast %208 : vector<1x32x12xf32> to vector<32x12xf32>
    %210 = arith.mulf %207, %209 : vector<32x12xf32>
    %c1 = arith.constant 1 : index
    %c0_77 = arith.constant 0 : index
    %c0_78 = arith.constant 0 : index
    %211 = vector.load %arg6[%c1, %c0_77, %c0_78] : memref<2x32x12xf32, #tpu.memory_space<vmem>>, vector<1x32x12xf32>
    %212 = vector.shape_cast %211 : vector<1x32x12xf32> to vector<32x12xf32>
    %213 = arith.addf %210, %212 : vector<32x12xf32>
    %c0_79 = arith.constant 0 : index
    %c0_80 = arith.constant 0 : index
    %214 = vector.load %arg7[%c0_79, %c0_80] : memref<4x32xf32, #tpu.memory_space<vmem>>, vector<4x32xf32>
    %cst_81 = arith.constant dense<0.000000e+00> : vector<4x12xf32>
    %215 = tpu.matmul %214, %213, %cst_81 {dimension_numbers = #tpu.dot_dimension_numbers<[1], [0], [0], [1], [0, 0, 1, 1], [], []>} : vector<4x32xf32>, vector<32x12xf32>, vector<4x12xf32> -> vector<4x12xf32>
    %cst_82 = arith.constant 3.000000e+00 : f32
    %216 = vector.broadcast %cst_82 : f32 to vector<4x12xf32>
    %217 = arith.addf %215, %216 : vector<4x12xf32>
    %cst_83 = arith.constant 0.000000e+00 : f32
    %cst_84 = arith.constant 6.000000e+00 : f32
    %218 = vector.broadcast %cst_83 : f32 to vector<4x12xf32>
    %219 = arith.maximumf %218, %217 : vector<4x12xf32>
    %220 = vector.broadcast %cst_84 : f32 to vector<4x12xf32>
    %221 = arith.minimumf %220, %219 : vector<4x12xf32>
    %222 = arith.mulf %215, %221 : vector<4x12xf32>
    %cst_85 = arith.constant 0.166666672 : f32
    %223 = vector.broadcast %cst_85 : f32 to vector<4x12xf32>
    %224 = arith.mulf %222, %223 : vector<4x12xf32>
    %c0_86 = arith.constant 0 : index
    %c0_87 = arith.constant 0 : index
    %225 = vector.load %arg8[%c0_86, %c0_87] : memref<32x4xf32, #tpu.memory_space<vmem>>, vector<32x4xf32>
    %cst_88 = arith.constant dense<0.000000e+00> : vector<32x12xf32>
    %226 = tpu.matmul %225, %224, %cst_88 {dimension_numbers = #tpu.dot_dimension_numbers<[1], [0], [0], [1], [0, 0, 1, 1], [], []>} : vector<32x4xf32>, vector<4x12xf32>, vector<32x12xf32> -> vector<32x12xf32>
    %227 = vector.extract_strided_slice %3 {offsets = [0, 0], sizes = [12, 1], strides = [1, 1]} : vector<12x2xf32> to vector<12x1xf32>
    %cst_89 = arith.constant dense<0.000000e+00> : vector<32x1xf32>
    %228 = tpu.matmul %183, %227, %cst_89 {dimension_numbers = #tpu.dot_dimension_numbers<[1], [0], [0], [1], [0, 0, 1, 1], [], []>} : vector<32x12xf32>, vector<12x1xf32>, vector<32x1xf32> -> vector<32x1xf32>
    %229 = vector.extract_strided_slice %3 {offsets = [0, 1], sizes = [12, 1], strides = [1, 1]} : vector<12x2xf32> to vector<12x1xf32>
    %cst_90 = arith.constant dense<0.000000e+00> : vector<32x1xf32>
    %230 = tpu.matmul %226, %229, %cst_90 {dimension_numbers = #tpu.dot_dimension_numbers<[1], [0], [0], [1], [0, 0, 1, 1], [], []>} : vector<32x12xf32>, vector<12x1xf32>, vector<32x1xf32> -> vector<32x1xf32>
    %231 = arith.addf %228, %230 : vector<32x1xf32>
    %232 = vector.extract_strided_slice %2 {offsets = [6, 0], sizes = [1, 1], strides = [1, 1]} : vector<7x192xf32> to vector<1x1xf32>
    %233 = vector.broadcast %232 : vector<1x1xf32> to vector<32x1xf32>
    %234 = arith.addf %231, %233 : vector<32x1xf32>
    %c0_91 = arith.constant 0 : index
    %c0_92 = arith.constant 0 : index
    %c0_93 = arith.constant 0 : index
    %235 = vector.load %arg10[%c0_91, %c0_92, %c0_93] : memref<1x32x1xf32, #tpu.memory_space<vmem>>, vector<1x32x1xf32>
    %236 = vector.shape_cast %235 : vector<1x32x1xf32> to vector<32x1xf32>
    %237 = vector.shape_cast %234 : vector<32x1xf32> to vector<1x32x1xf32>
    tpu.vector_store %arg10[%c0_91, %c0_92, %c0_93], %237 {strides = array<i32>} : memref<1x32x1xf32, #tpu.memory_space<vmem>>, vector<1x32x1xf32>,
    return
  }
  func.func @transform_0(%arg0: i32) -> (i32, i32, i32) {
    %c0_i32 = arith.constant 0 : i32
    %c0_i32_0 = arith.constant 0 : i32
    %c0_i32_1 = arith.constant 0 : i32
    return %arg0, %c0_i32, %c0_i32_0 : i32, i32, i32
  }
  func.func @transform_1(%arg0: i32) -> (i32, i32) {
    %c0_i32 = arith.constant 0 : i32
    %c0_i32_0 = arith.constant 0 : i32
    %c0_i32_1 = arith.constant 0 : i32
    return %c0_i32, %c0_i32_0 : i32, i32
  }
  func.func @transform_2(%arg0: i32) -> (i32, i32) {
    %c0_i32 = arith.constant 0 : i32
    %c0_i32_0 = arith.constant 0 : i32
    %c0_i32_1 = arith.constant 0 : i32
    return %c0_i32, %c0_i32_0 : i32, i32
  }
  func.func @transform_3(%arg0: i32) -> (i32, i32) {
    %c0_i32 = arith.constant 0 : i32
    %c0_i32_0 = arith.constant 0 : i32
    %c0_i32_1 = arith.constant 0 : i32
    return %c0_i32, %c0_i32_0 : i32, i32
  }
  func.func @transform_4(%arg0: i32) -> (i32, i32) {
    %c0_i32 = arith.constant 0 : i32
    %c0_i32_0 = arith.constant 0 : i32
    %c0_i32_1 = arith.constant 0 : i32
    return %c0_i32, %c0_i32_0 : i32, i32
  }
  func.func @transform_5(%arg0: i32) -> (i32, i32, i32) {
    %c0_i32 = arith.constant 0 : i32
    %c0_i32_0 = arith.constant 0 : i32
    %c0_i32_1 = arith.constant 0 : i32
    %c0_i32_2 = arith.constant 0 : i32
    return %c0_i32, %c0_i32_0, %c0_i32_1 : i32, i32, i32
  }
  func.func @transform_6(%arg0: i32) -> (i32, i32) {
    %c0_i32 = arith.constant 0 : i32
    %c0_i32_0 = arith.constant 0 : i32
    %c0_i32_1 = arith.constant 0 : i32
    return %c0_i32, %c0_i32_0 : i32, i32
  }
  func.func @transform_7(%arg0: i32) -> (i32, i32) {
    %c0_i32 = arith.constant 0 : i32
    %c0_i32_0 = arith.constant 0 : i32
    %c0_i32_1 = arith.constant 0 : i32
    return %c0_i32, %c0_i32_0 : i32, i32
  }
  func.func @transform_8(%arg0: i32) -> (i32, i32) {
    %c0_i32 = arith.constant 0 : i32
    %c0_i32_0 = arith.constant 0 : i32
    %c0_i32_1 = arith.constant 0 : i32
    return %c0_i32, %c0_i32_0 : i32, i32
  }
  func.func @transform_9(%arg0: i32) -> (i32, i32, i32) {
    %c0_i32 = arith.constant 0 : i32
    %c0_i32_0 = arith.constant 0 : i32
    %c0_i32_1 = arith.constant 0 : i32
    return %arg0, %c0_i32, %c0_i32_0 : i32, i32, i32
  }
}

</mosaic_0001>

<bundles_post_ra>
// kernel: stockmixer_forward.1
= control target key start
LH: loop header
LB: loop body
LE: loop exit
PB: predicated region body
PF: predicated region fallthrough
CT: control target
= control target key end

     0   :  { %s2726_s30 = smov 0   ;;  %s4160_s0 = inlined_call_operand.vmem [shape: f32[4,32,128], index: 0, kind: input, shape index: {}]   ;;  %s4161_s1 = inlined_call_operand.vmem [shape: f32[896,192], index: 1, kind: input, shape index: {}]   ;;  %s4162_s2 = inlined_call_operand.vmem [shape: f32[192,384], index: 2, kind: input, shape index: {}]   ;;  %s4163_s3 = inlined_call_operand.vmem [shape: f32[192,12], index: 3, kind: input, shape index: {}]   ;;  %s4164_s4 = inlined_call_operand.vmem [shape: f32[7,192], index: 4, kind: input, shape index: {}]   ;;  %s4165_s5 = inlined_call_operand.vmem [shape: f32[2,32,12], index: 5, kind: input, shape index: {}]   ;;  %s4166_s6 = inlined_call_operand.vmem [shape: f32[4,32], index: 6, kind: input, shape index: {}]   ;;  %s4167_s7 = inlined_call_operand.vmem [shape: f32[32,4], index: 7, kind: input, shape index: {}]   ;;  %s4168_s8 = inlined_call_operand.vmem [shape: f32[12,2], index: 8, kind: input, shape index: {}]   ;;  %s4169_s9 = inlined_call_operand.vmem [shape: f32[4,32,1], index: 9, kind: output, shape index: {}]  }
   0x1 LB: > { %s2504_s10 = sadd.s32 4294967295, %s2671_s30   ;;  %p2508_p0 = scmp.ge.s32.totalorder %s2671_s30, 1  ;;  %s2671_s30 = sphi %s2726_s30, %s19_s30  }
   0x2   : > { %p287_p1 = scmp.lt.s32.totalorder %s2671_s30, 5 }
   0x4   : > { %p288_p2 = pnand %p2508_p0, %p287_p1 }
   0x5   : > { %p323_p3 = scmp.lt.s32.totalorder (!%p288_p2), %s2504_s10, 3  ;;  %s2675_s18 = smov (!%p288_p2), 127  }
   0x6   : > { %291 = sbr.rel (%p288_p2) target bundleno = 2846 (0xb1e), region = 56 }
   0xb   : > { %v372_v0 = vld [vmem:[%s4161_s1 + $0xf8] sm:$0xff]  ;;  %v371_v1 = vld [vmem:[%s4161_s1 + $0xf0] sm:$0xff]  ;;  %v370_v2 = vld [vmem:[%s4161_s1 + $0xe8] sm:$0xff]  ;;  %v2673_v4 = vmov 0.0   ;;  %s4171_s10 = smov (!%p323_p3, %s2504_s10), 3  ;;  %v565_v37 = vlaneseq  ;;  %vm744_vm0 = vcmask 523264  }
   0xc   : > { %573 = vmatprep.subr.mxu0 %v372_v0  ;;  %v369_v3 = vld [vmem:[%s4161_s1 + $0xe0] sm:$0xff]  ;;  %637 = vmatprep.mubr.f32.mxu0 %v2673_v4  ;;  %v368_v5 = vld [vmem:[%s4161_s1 + $0xd8] sm:$0xff]  ;;  %v367_v6 = vld [vmem:[%s4161_s1 + $0xd0] sm:$0xff]  ;;  %s2555_s27 = sshll.u32 %s4171_s10, 5  ;;  %vm1959_vm2 = vcmask 97280   ;;  %vm2674_vm3 = vmmov 0  }
   0xd   : > { %574 = vmatpush1.msra.mxu0 %v371_v1  ;;  %v366_v7 = vld [vmem:[%s4161_s1 + $0xc8] sm:$0xff]  ;;  %v365_v8 = vld [vmem:[%s4161_s1 + $0xc0] sm:$0xff]  ;;  %v364_v9 = vld [vmem:[%s4161_s1 + $0xb8] sm:$0xff]  ;;  %s327_s17 = scalar_lea.vmem %s4160_s0, %s2555_s27  ;;  %v2848_v38 = vshrl.u32 %v565_v37, 7  ;;  %vm2046_vm4 = vcmask 261120   ;;  %vm2129_vm5 = vcmask 31744   ;;  %s332_s28 = scalar_lea.vmem %s4169_s9, %s2555_s27 }
   0xe   : > { %575 = vmatprep.subr.mxu0 %v370_v2  ;;  %v363_v10 = vld [vmem:[%s4161_s1 + $0xb0] sm:$0xff]  ;;  %v362_v11 = vld [vmem:[%s4161_s1 + $0xa8] sm:$0xff]  ;;  %v361_v12 = vld [vmem:[%s4161_s1 + $0xa0] sm:$0xff]  ;;  %vm2142_vm6 = vcmask 1043456   ;;  %vm2444_vm7 = vcmask 7168  }
   0xf   : > { %576 = vmatpush1.msra.mxu0 %v369_v3  ;;  %v360_v13 = vld [vmem:[%s4161_s1 + $0x98] sm:$0xff]  ;;  %v359_v14 = vld [vmem:[%s4161_s1 + $0x90] sm:$0xff]  ;;  %v358_v15 = vld [vmem:[%s4161_s1 + $0x88] sm:$0xff]  ;;  %v567_v40 = vsub.s32 0, %v2848_v38 }
  0x10   : > { %577 = vmatprep.subr.mxu0 %v368_v5  ;;  %v357_v16 = vld [vmem:[%s4161_s1 + $0x80] sm:$0xff]  ;;  %v356_v17 = vld [vmem:[%s4161_s1 + $0x78] sm:$0xff]  ;;  %v355_v18 = vld [vmem:[%s4161_s1 + $0x70] sm:$0xff] }
  0x11   : > { %578 = vmatpush1.msra.mxu0 %v367_v6  ;;  %v354_v19 = vld [vmem:[%s4161_s1 + $0x68] sm:$0xff]  ;;  %v353_v20 = vld [vmem:[%s4161_s1 + $0x60] sm:$0xff]  ;;  %v352_v21 = vld [vmem:[%s4161_s1 + $0x58] sm:$0xff] }
  0x12   : > { %579 = vmatprep.subr.mxu0 %v366_v7  ;;  %v351_v22 = vld [vmem:[%s4161_s1 + $0x50] sm:$0xff]  ;;  %v350_v23 = vld [vmem:[%s4161_s1 + $0x48] sm:$0xff]  ;;  %v349_v24 = vld [vmem:[%s4161_s1 + $0x40] sm:$0xff] }
  0x13   : > { %580 = vmatpush1.msra.mxu0 %v365_v8  ;;  %v348_v25 = vld [vmem:[%s4161_s1 + $0x38] sm:$0xff]  ;;  %v347_v26 = vld [vmem:[%s4161_s1 + $0x30] sm:$0xff]  ;;  %v346_v27 = vld [vmem:[%s4161_s1 + $0x28] sm:$0xff] }
  0x14   : > { %581 = vmatprep.subr.mxu0 %v364_v9  ;;  %v345_v28 = vld [vmem:[%s4161_s1 + $0x20] sm:$0xff]  ;;  %v344_v29 = vld [vmem:[%s4161_s1 + $0x18] sm:$0xff]  ;;  %v343_v30 = vld [vmem:[%s4161_s1 + $0x10] sm:$0xff] }
  0x15   : > { %582 = vmatpush1.msra.mxu0 %v363_v10  ;;  %v342_v31 = vld [vmem:[%s4161_s1 + $0x8] sm:$0xff]  ;;  %v341_v32 = vld [vmem:[%s4161_s1] sm:$0xff]  ;;  %v335_v35 = vld [vmem:[%s327_s17 + $0x10] sm:$0xff] }
  0x16   : > { %583 = vmatprep.subr.mxu0 %v362_v11  ;;  %v333_v33 = vld [vmem:[%s327_s17] sm:$0xff]  ;;  %v334_v34 = vld [vmem:[%s327_s17 + $0x8] sm:$0xff]  ;;  %v336_v36 = vld [vmem:[%s327_s17 + $0x18] sm:$0xff] }
  0x17   : > { %584 = vmatpush1.msra.mxu0 %v361_v12  ;;  %v2853_v39 = vld [vmem:[%s4164_s4 + $0x8] sm:$0x7f]  ;;  %v2860_v43 = vld [vmem:[%s4164_s4] sm:$0x7f]  ;;  %v926_v0 = vld [vmem:[%s4162_s2 + $0x170] sm:$0xff] }
  0x18   : > { %585 = vmatprep.subr.mxu0 %v360_v13  ;;  %v572_v41 = vrot.slane %v2853_v39, %v567_v40  ;;  %v568_v46 = vrot.slane %v2860_v43, %v567_v40  ;;  %v925_v1 = vld [vmem:[%s4162_s2 + $0x168] sm:$0xff]  ;;  %v927_v2 = vld [vmem:[%s4162_s2 + $0x178] sm:$0xff]  ;;  %964 = vmatprep.subr.mxu1 %v926_v0  ;;  %v922_v5 = vld [vmem:[%s4162_s2 + $0x150] sm:$0xff] }
  0x19   : > { %586 = vmatpush1.msra.mxu0 %v359_v14  ;;  %v923_v3 = vld [vmem:[%s4162_s2 + $0x158] sm:$0xff]  ;;  %v924_v6 = vld [vmem:[%s4162_s2 + $0x160] sm:$0xff]  ;;  %965 = vmatpush1.msra.mxu1 %v925_v1  ;;  %v921_v8 = vld [vmem:[%s4162_s2 + $0x148] sm:$0xff] }
  0x1a   : > { %587 = vmatprep.subr.mxu0 %v358_v15  ;;  %v920_v7 = vld [vmem:[%s4162_s2 + $0x140] sm:$0xff]  ;;  %966 = vmatprep.subr.mxu1 %v923_v3  ;;  %v919_v9 = vld [vmem:[%s4162_s2 + $0x138] sm:$0xff]  ;;  %v917_v10 = vld [vmem:[%s4162_s2 + $0x128] sm:$0xff] }
  0x1b   : > { %588 = vmatpush1.msra.mxu0 %v357_v16  ;;  %967 = vmatpush1.msra.mxu1 %v922_v5  ;;  %v918_v11 = vld [vmem:[%s4162_s2 + $0x130] sm:$0xff]  ;;  %v916_v12 = vld [vmem:[%s4162_s2 + $0x120] sm:$0xff]  ;;  %v915_v14 = vld [vmem:[%s4162_s2 + $0x118] sm:$0xff] }
  0x1c   : > { %589 = vmatprep.subr.mxu0 %v356_v17  ;;  %968 = vmatprep.subr.mxu1 %v920_v7  ;;  %v914_v13 = vld [vmem:[%s4162_s2 + $0x110] sm:$0xff]  ;;  %v913_v15 = vld [vmem:[%s4162_s2 + $0x108] sm:$0xff]  ;;  %v911_v16 = vld [vmem:[%s4162_s2 + $0xf8] sm:$0xff] }
  0x1d   : > { %590 = vmatpush1.msra.mxu0 %v355_v18  ;;  %969 = vmatpush1.msra.mxu1 %v919_v9  ;;  %v912_v17 = vld [vmem:[%s4162_s2 + $0x100] sm:$0xff]  ;;  %v910_v18 = vld [vmem:[%s4162_s2 + $0xf0] sm:$0xff] }
  0x1e   : > { %591 = vmatprep.subr.mxu0 %v354_v19  ;;  %970 = vmatprep.subr.mxu1 %v917_v10  ;;  %v908_v19 = vld [vmem:[%s4162_s2 + $0xe0] sm:$0xff] }
  0x1f   : > { %592 = vmatpush1.msra.mxu0 %v353_v20  ;;  %971 = vmatpush1.msra.mxu1 %v916_v12  ;;  %v909_v20 = vld [vmem:[%s4162_s2 + $0xe8] sm:$0xff] }
  0x20   : > { %593 = vmatprep.subr.mxu0 %v352_v21  ;;  %972 = vmatprep.subr.mxu1 %v914_v13  ;;  %v907_v21 = vld [vmem:[%s4162_s2 + $0xd8] sm:$0xff] }
  0x21   : > { %594 = vmatpush1.msra.mxu0 %v351_v22  ;;  %973 = vmatpush1.msra.mxu1 %v913_v15  ;;  %v905_v22 = vld [vmem:[%s4162_s2 + $0xc8] sm:$0xff] }
  0x22   : > { %595 = vmatprep.subr.mxu0 %v350_v23  ;;  %974 = vmatprep.subr.mxu1 %v911_v16  ;;  %v906_v23 = vld [vmem:[%s4162_s2 + $0xd0] sm:$0xff]  ;;  %v897_v15 = vld [vmem:[%s4162_s2 + $0x88] sm:$0xff] }
  0x23   : > { %596 = vmatpush1.msra.mxu0 %v349_v24  ;;  %975 = vmatpush1.msra.mxu1 %v910_v18  ;;  %v904_v24 = vld [vmem:[%s4162_s2 + $0xc0] sm:$0xff]  ;;  %v893_v16 = vld [vmem:[%s4162_s2 + $0x68] sm:$0xff] }
  0x24   : > { %597 = vmatprep.subr.mxu0 %v348_v25  ;;  %976 = vmatprep.subr.mxu1 %v908_v19  ;;  %v902_v25 = vld [vmem:[%s4162_s2 + $0xb0] sm:$0xff]  ;;  %v892_v19 = vld [vmem:[%s4162_s2 + $0x60] sm:$0xff] }
  0x25   : > { %598 = vmatpush1.msra.mxu0 %v347_v26  ;;  %977 = vmatpush1.msra.mxu1 %v907_v21  ;;  %v903_v26 = vld [vmem:[%s4162_s2 + $0xb8] sm:$0xff]  ;;  %v890_v21 = vld [vmem:[%s4162_s2 + $0x50] sm:$0xff] }
  0x26   : > { %599 = vmatprep.subr.mxu0 %v346_v27  ;;  %978 = vmatprep.subr.mxu1 %v905_v22  ;;  %v901_v27 = vld [vmem:[%s4162_s2 + $0xa8] sm:$0xff] }
  0x27   : > { %600 = vmatpush1.msra.mxu0 %v345_v28  ;;  %979 = vmatpush1.msra.mxu1 %v904_v24  ;;  %v899_v28 = vld [vmem:[%s4162_s2 + $0x98] sm:$0xff] }
  0x28   : > { %601 = vmatprep.subr.mxu0 %v344_v29  ;;  %v900_v29 = vld [vmem:[%s4162_s2 + $0xa0] sm:$0xff]  ;;  %980 = vmatprep.subr.mxu1 %v902_v25  ;;  %v891_v24 = vld [vmem:[%s4162_s2 + $0x58] sm:$0xff] }
  0x29   : > { %602 = vmatpush1.msra.mxu0 %v343_v30  ;;  %v898_v30 = vld [vmem:[%s4162_s2 + $0x90] sm:$0xff]  ;;  %981 = vmatpush1.msra.mxu1 %v901_v27  ;;  %v887_v25 = vld [vmem:[%s4162_s2 + $0x38] sm:$0xff]  ;;  %v888_v27 = vld [vmem:[%s4162_s2 + $0x40] sm:$0xff] }
  0x2a   : > { %603 = vmatprep.subr.mxu0 %v342_v31  ;;  %v896_v31 = vld [vmem:[%s4162_s2 + $0x80] sm:$0xff]  ;;  %982 = vmatprep.subr.mxu1 %v899_v28 }
  0x2b   : > { %604 = vmatpush1.msra.mxu0 %v341_v32  ;;  %983 = vmatpush1.msra.mxu1 %v898_v30  ;;  %v884_v28 = vld [vmem:[%s4162_s2 + $0x20] sm:$0xff]  ;;  %v885_v30 = vld [vmem:[%s4162_s2 + $0x28] sm:$0xff] }
  0x2c   : > { %638 = vmatmul.mubr.f32.vlgmr.msra.gmra.mxu0 %v333_v33  ;;  %1053 = vmatprep.subr.mxu0 %v2673_v4 }
  0x2d   : > { %643 = vmatprep.mubr.f32.mxu0 %v2673_v4  ;;  %1054 = vmatpush1.msra.mxu0 %v927_v2 }
  0x2e   : > { %1055 = vmatprep.subr.mxu0 %v2673_v4  ;;  %984 = vmatprep.subr.mxu1 %v896_v31  ;;  %v881_v31 = vld [vmem:[%s4162_s2 + $0x8] sm:$0xff] }
  0x2f   : > { %1056 = vmatpush1.msra.mxu0 %v924_v6 }
  0x30   : > { %644 = vmatmul.mubr.f32.gmra.mxu0 %v334_v34  ;;  %1057 = vmatprep.subr.mxu0 %v2673_v4 }
  0x31   : > { %649 = vmatprep.mubr.f32.mxu0 %v2673_v4  ;;  %1058 = vmatpush1.msra.mxu0 %v921_v8 }
  0x32   : > { %1059 = vmatprep.subr.mxu0 %v2673_v4 }
  0x33   : > { %1060 = vmatpush1.msra.mxu0 %v918_v11 }
  0x34   : > { %650 = vmatmul.mubr.f32.gmra.mxu0 %v335_v35  ;;  %1061 = vmatprep.subr.mxu0 %v2673_v4 }
  0x35   : > { %655 = vmatprep.mubr.f32.mxu0 %v2673_v4  ;;  %1062 = vmatpush1.msra.mxu0 %v915_v14  ;;  %v895_v14 = vld [vmem:[%s4162_s2 + $0x78] sm:$0xff] }
  0x36   : > { %1063 = vmatprep.subr.mxu0 %v2673_v4  ;;  %985 = vmatpush1.msra.mxu1 %v895_v14  ;;  %v404_v14 = vld [vmem:[%s4161_s1 + $0x1f8] sm:$0xff] }
  0x37   : > { %1064 = vmatpush1.msra.mxu0 %v912_v17  ;;  %986 = vmatprep.subr.mxu1 %v893_v16 }
  0x38   : > { %656 = vmatmul.mubr.f32.gmra.mxu0 %v336_v36  ;;  %1065 = vmatprep.subr.mxu0 %v2673_v4 }
  0x39   : > { %1066 = vmatpush1.msra.mxu0 %v909_v20  ;;  %v894_v20 = vld [vmem:[%s4162_s2 + $0x70] sm:$0xff]  ;;  %987 = vmatpush1.msra.mxu1 %v892_v19 }
  0x3a   : > { %1067 = vmatprep.subr.mxu0 %v2673_v4  ;;  %988 = vmatprep.subr.mxu1 %v890_v21  ;;  %v663_v21 = vand.u32 127, %v565_v37 }
  0x3b   : > { %1068 = vmatpush1.msra.mxu0 %v906_v23  ;;  %v889_v23 = vld [vmem:[%s4162_s2 + $0x48] sm:$0xff] }
  0x3c   : > { %1069 = vmatprep.subr.mxu0 %v2673_v4  ;;  %989 = vmatpush1.msra.mxu1 %v889_v23 }
  0x3d   : > { %1070 = vmatpush1.msra.mxu0 %v903_v26  ;;  %v886_v26 = vld [vmem:[%s4162_s2 + $0x30] sm:$0xff]  ;;  %990 = vmatprep.subr.mxu1 %v887_v25 }
  0x3e   : > { %1071 = vmatprep.subr.mxu0 %v2673_v4  ;;  %991 = vmatpush1.msra.mxu1 %v886_v26 }
  0x3f   : > { %1072 = vmatpush1.msra.mxu0 %v900_v29  ;;  %v883_v29 = vld [vmem:[%s4162_s2 + $0x18] sm:$0xff]  ;;  %992 = vmatprep.subr.mxu1 %v884_v28  ;;  %v3177_v28 = vadd.s32 128, %v663_v21 }
  0x40   : > { %1073 = vmatprep.subr.mxu0 %v2673_v4  ;;  %993 = vmatpush1.msra.mxu1 %v883_v29 }
  0x41   : > { %1074 = vmatpush1.msra.mxu0 %v897_v15  ;;  %994 = vmatprep.subr.mxu1 %v881_v31  ;;  %v468_v15 = vld [vmem:[%s4161_s1 + $0x3f8] sm:$0xff]  ;;  %vm797_vm1 = vcmp.lt.s32.totalorder %v3177_v28, 192  ;;  %v561_v28 = vld [vmem:[%s4161_s1 + $0x6e0] sm:$0xff] }
  0x42   : > { %1075 = vmatprep.subr.mxu0 %v2673_v4 }
  0x43   : > { %1076 = vmatpush1.msra.mxu0 %v894_v20 }
  0x44   : > { %1077 = vmatprep.subr.mxu0 %v2673_v4 }
  0x45   : > { %1078 = vmatpush1.msra.mxu0 %v891_v24 }
  0x46   : > { %1079 = vmatprep.subr.mxu0 %v2673_v4 }
  0x47   : > { %1080 = vmatpush1.msra.mxu0 %v888_v27 }
  0x48   : > { %1081 = vmatprep.subr.mxu0 %v2673_v4 }
  0x49   : > { %1082 = vmatpush1.msra.mxu0 %v885_v30 }
  0x4a   : > { %1083 = vmatprep.subr.mxu0 %v2673_v4 }
  0xec   : > { %v639_v42 = vpop.f32.mrf.mxu0 }
  0xed   : > { %v2869_v51 = vadd.f32 %v639_v42, %v568_v46 }
  0xee   : > { %v641_v44 = vpop.f32.mrf.mxu0 }
  0xef   : > { %v2862_v45 = vadd.f32 %v641_v44, %v572_v41 }
  0xf0   : > { %v645_v47 = vpop.f32.mrf.mxu0 }
  0xf1   : > { %v745_v48 = vsel %vm744_vm0, %v2862_v45, 0.0  ;;  %v2876_v56 = vadd.f32 %v645_v47, %v568_v46 }
  0xf2   : > { %v647_v49 = vpop.f32.mrf.mxu0  ;;  %746 = vadd.xlane.f32.xlu0 %v745_v48 }
  0xf3   : > { %v2867_v50 = vadd.f32 %v647_v49, %v572_v41 }
  0xf4   : > { %v651_v52 = vpop.f32.mrf.mxu0 }
  0xf5   : > { %v748_v53 = vsel %vm744_vm0, %v2867_v50, 0.0  ;;  %v2883_v61 = vadd.f32 %v651_v52, %v568_v46 }
  0xf6   : > { %v653_v54 = vpop.f32.mrf.mxu0  ;;  %749 = vadd.xlane.f32.xlu1 %v748_v53  ;;  %665 = vadd.xlane.f32.xlu0 %v2869_v51 }
  0xf7   : > { %v2874_v55 = vadd.f32 %v653_v54, %v572_v41 }
  0xf8   : > { %v657_v57 = vpop.f32.mrf.mxu0 }
  0xf9   : > { %v751_v58 = vsel %vm744_vm0, %v2874_v55, 0.0  ;;  %v2888_v63 = vadd.f32 %v657_v57, %v568_v46 }
  0xfa   : > { %v659_v59 = vpop.f32.mrf.mxu0  ;;  %667 = vadd.xlane.f32.xlu1 %v2876_v56  ;;  %752 = vadd.xlane.f32.xlu0 %v751_v58 }
  0xfb   : > { %v2881_v60 = vadd.f32 %v659_v59, %v572_v41 }
  0xfd   : > { %v754_v62 = vsel %vm744_vm0, %v2881_v60, 0.0 }
  0xfe   : > { %669 = vadd.xlane.f32.xlu1 %v2883_v61  ;;  %755 = vadd.xlane.f32.xlu0 %v754_v62 }
 0x102   : > { %671 = vadd.xlane.f32.xlu1 %v2888_v63 }
 0x17b   : > { %v747_v32 = vpop.xlane.xlu0 %746 }
 0x17c   : > { %v2994_v33 = vmul.f32 0.015625, %v747_v32  ;;  %v880_v32 = vld [vmem:[%s4162_s2] sm:$0xff] }
 0x17d   : > { %995 = vmatpush1.msra.mxu1 %v880_v32 }
 0x17e   : > { %v762_v34 = vsub.f32 %v2862_v45, %v2994_v33 }
 0x17f   : > { %v750_v35 = vpop.xlane.xlu1 %749  ;;  %v666_v36 = vpop.xlane.xlu0 %665 }
 0x180   : > { %v2998_v40 = vmul.f32 0.015625, %v750_v35  ;;  %v674_v41 = vmul.f32 0.0078125, %v666_v36  ;;  %v766_v42 = vmul.f32 %v762_v34, %v762_v34  ;;  %v882_v34 = vld [vmem:[%s4162_s2 + $0x10] sm:$0xff]  ;;  %v949_v36 = vld [vmem:[%s4162_s2 + $0x228] sm:$0xff] }
 0x181   : > { %v950_v35 = vld [vmem:[%s4162_s2 + $0x230] sm:$0xff]  ;;  %1084 = vmatpush1.msra.mxu0 %v882_v34 }
 0x182   : > { %v763_v44 = vsub.f32 %v2867_v50, %v2998_v40  ;;  %v3003_v46 = vsub.f32 %v2869_v51, %v674_v41  ;;  %v770_v47 = vsel %vm744_vm0, %v766_v42, 0.0  ;;  %v951_v41 = vld [vmem:[%s4162_s2 + $0x238] sm:$0xff]  ;;  %1012 = vmatprep.subr.mxu1 %v950_v35  ;;  %1101 = vmatprep.subr.mxu0 %v2673_v4 }
 0x183   : > { %v668_v48 = vpop.xlane.xlu1 %667  ;;  %771 = vadd.xlane.f32.xlu0 %v770_v47  ;;  %v753_v49 = vpop.xlane.xlu0 %752  ;;  %v947_v42 = vld [vmem:[%s4162_s2 + $0x218] sm:$0xff]  ;;  %1013 = vmatpush2.msra.mxu1 %v949_v36  ;;  %v948_v47 = vld [vmem:[%s4162_s2 + $0x220] sm:$0xff] }
 0x184   : > { %v675_v52 = vmul.f32 0.0078125, %v668_v48  ;;  %v3006_v53 = vmul.f32 0.015625, %v753_v49  ;;  %v682_v54 = vmul.f32 %v3003_v46, %v3003_v46  ;;  %v767_v57 = vmul.f32 %v763_v44, %v763_v44  ;;  %v946_v44 = vld [vmem:[%s4162_s2 + $0x210] sm:$0xff]  ;;  %1102 = vmatpush2.msra.mxu0 %v951_v41  ;;  %1014 = vmatprep.subr.mxu1 %v947_v42  ;;  %v944_v48 = vld [vmem:[%s4162_s2 + $0x200] sm:$0xff]  ;;  %v943_v49 = vld [vmem:[%s4162_s2 + $0x1f8] sm:$0xff] }
 0x185   : > { %1103 = vmatprep.subr.mxu0 %v2673_v4  ;;  %1015 = vmatpush2.msra.mxu1 %v946_v44  ;;  %v850_v44 = vsub.s32 1, %v2848_v38 }
 0x186   : > { %v3011_v58 = vsub.f32 %v2876_v56, %v675_v52  ;;  %v764_v59 = vsub.f32 %v2874_v55, %v3006_v53  ;;  %686 = vadd.xlane.f32.xlu1 %v682_v54  ;;  %v773_v62 = vsel %vm744_vm0, %v767_v57, 0.0  ;;  %v945_v52 = vld [vmem:[%s4162_s2 + $0x208] sm:$0xff]  ;;  %1104 = vmatpush2.msra.mxu0 %v948_v47  ;;  %v940_v57 = vld [vmem:[%s4162_s2 + $0x1e0] sm:$0xff]  ;;  %v801_v47 = vsel %vm797_vm1, %v2994_v33, 0.0 }
 0x187   : > { %v670_v0 = vpop.xlane.xlu1 %669  ;;  %774 = vadd.xlane.f32.xlu0 %v773_v62  ;;  %v756_v1 = vpop.xlane.xlu0 %755  ;;  %1016 = vmatprep.subr.mxu1 %v944_v48  ;;  %v941_v54 = vld [vmem:[%s4162_s2 + $0x1e8] sm:$0xff]  ;;  %v938_v62 = vld [vmem:[%s4162_s2 + $0x1d0] sm:$0xff] }
 0x188   : > { %v676_v2 = vmul.f32 0.0078125, %v670_v0  ;;  %v3016_v3 = vmul.f32 0.015625, %v756_v1  ;;  %v683_v5 = vmul.f32 %v3011_v58, %v3011_v58  ;;  %v768_v6 = vmul.f32 %v764_v59, %v764_v59  ;;  %1105 = vmatprep.subr.mxu0 %v2673_v4  ;;  %1017 = vmatpush2.msra.mxu1 %v943_v49  ;;  %v942_v59 = vld [vmem:[%s4162_s2 + $0x1f0] sm:$0xff]  ;;  %v937_v0 = vld [vmem:[%s4162_s2 + $0x1c8] sm:$0xff]  ;;  %v939_v1 = vld [vmem:[%s4162_s2 + $0x1d8] sm:$0xff] }
 0x189   : > { %1106 = vmatpush2.msra.mxu0 %v945_v52  ;;  %1018 = vmatprep.subr.mxu1 %v941_v54  ;;  %v866_v54 = vsub.s32 2, %v2848_v38 }
 0x18a   : > { %v3021_v7 = vsub.f32 %v2883_v61, %v676_v2  ;;  %v765_v8 = vsub.f32 %v2881_v60, %v3016_v3  ;;  %688 = vadd.xlane.f32.xlu1 %v683_v5  ;;  %v776_v9 = vsel %vm744_vm0, %v768_v6, 0.0  ;;  %1107 = vmatprep.subr.mxu0 %v2673_v4  ;;  %v935_v2 = vld [vmem:[%s4162_s2 + $0x1b8] sm:$0xff]  ;;  %v934_v5 = vld [vmem:[%s4162_s2 + $0x1b0] sm:$0xff]  ;;  %v936_v6 = vld [vmem:[%s4162_s2 + $0x1c0] sm:$0xff] }
 0x18b   : > { %v672_v10 = vpop.xlane.xlu1 %671  ;;  %777 = vadd.xlane.f32.xlu0 %v776_v9  ;;  %1019 = vmatpush2.msra.mxu1 %v940_v57  ;;  %v931_v9 = vld [vmem:[%s4162_s2 + $0x198] sm:$0xff] }
 0x18c   : > { %v677_v11 = vmul.f32 0.0078125, %v672_v10  ;;  %v684_v12 = vmul.f32 %v3021_v7, %v3021_v7  ;;  %v769_v13 = vmul.f32 %v765_v8, %v765_v8  ;;  %1108 = vmatpush2.msra.mxu0 %v942_v59  ;;  %1020 = vmatprep.subr.mxu1 %v938_v62  ;;  %v932_v8 = vld [vmem:[%s4162_s2 + $0x1a0] sm:$0xff]  ;;  %v933_v10 = vld [vmem:[%s4162_s2 + $0x1a8] sm:$0xff]  ;;  %v833_v59 = vsub.f32 %v2862_v45, %v801_v47  ;;  %v400_v47 = vld [vmem:[%s4161_s1 + $0x1d8] sm:$0xff] }
 0x18d   : > { %1109 = vmatprep.subr.mxu0 %v2673_v4  ;;  %1021 = vmatpush2.msra.mxu1 %v937_v0  ;;  %v803_v62 = vsel %vm797_vm1, %v2998_v40, 0.0  ;;  %v805_v40 = vsel %vm797_vm1, %v3006_v53, 0.0  ;;  %v807_v53 = vsel %vm797_vm1, %v3016_v3, 0.0 }
 0x18e   : > { %v3038_v17 = vsub.f32 %v2888_v63, %v677_v11  ;;  %690 = vadd.xlane.f32.xlu1 %v684_v12  ;;  %v779_v18 = vsel %vm744_vm0, %v769_v13, 0.0  ;;  %1110 = vmatpush2.msra.mxu0 %v939_v1  ;;  %v929_v11 = vld [vmem:[%s4162_s2 + $0x188] sm:$0xff]  ;;  %v928_v12 = vld [vmem:[%s4162_s2 + $0x180] sm:$0xff]  ;;  %v930_v13 = vld [vmem:[%s4162_s2 + $0x190] sm:$0xff]  ;;  %v3190_v1 = vrot.slane %v2853_v39, %v850_v44 }
 0x18f   : > { %780 = vadd.xlane.f32.xlu0 %v779_v18  ;;  %1022 = vmatprep.subr.mxu1 %v935_v2 }
 0x190   : > { %v685_v22 = vmul.f32 %v3038_v17, %v3038_v17  ;;  %1111 = vmatprep.subr.mxu0 %v2673_v4  ;;  %1023 = vmatpush2.msra.mxu1 %v934_v5  ;;  %v3195_v5 = vrot.slane %v2853_v39, %v866_v54 }
 0x191   : > { %1112 = vmatpush2.msra.mxu0 %v936_v6  ;;  %1024 = vmatprep.subr.mxu1 %v932_v8  ;;  %v3198_v6 = vrot.slane %v2860_v43, %v850_v44 }
 0x192   : > { %692 = vadd.xlane.f32.xlu1 %v685_v22  ;;  %1113 = vmatprep.subr.mxu0 %v2673_v4 }
 0x193   : > { %1025 = vmatpush2.msra.mxu1 %v931_v9  ;;  %1114 = vmatpush2.msra.mxu0 %v933_v10  ;;  %v835_v9 = vsub.f32 %v2867_v50, %v803_v62  ;;  %v463_v62 = vld [vmem:[%s4161_s1 + $0x3d0] sm:$0xff] }
 0x194   : > { %1026 = vmatprep.subr.mxu1 %v929_v11  ;;  %1115 = vmatprep.subr.mxu0 %v2673_v4 }
 0x195   : > { %1027 = vmatpush2.msra.mxu1 %v928_v12  ;;  %1116 = vmatpush2.msra.mxu0 %v930_v13  ;;  %v3207_v13 = vrot.slane %v2860_v43, %v866_v54 }
 0x196   : > { %1198 = vmatprep.subr.mxu1 %v404_v14  ;;  %1287 = vmatprep.subr.mxu0 %v468_v15 }
 0x20c   : > { %v772_v16 = vpop.xlane.xlu0 %771 }
 0x20d   : > { %v782_v18 = vmul.f32 0.015625, %v772_v16 }
 0x20f   : > { %v786_v19 = vadd.f32 1e-05, %v782_v18  ;;  %v687_v20 = vpop.xlane.xlu1 %686 }
 0x210   : > { %v694_v22 = vmul.f32 0.0078125, %v687_v20  ;;  %v775_v23 = vpop.xlane.xlu0 %774 }
 0x211   : > { %2629 = vrsqrt.f32 %v786_v19  ;;  %v783_v24 = vmul.f32 0.015625, %v775_v23  ;;  %v837_v19 = vsub.f32 %v2874_v55, %v805_v40  ;;  %v467_v23 = vld [vmem:[%s4161_s1 + $0x3f0] sm:$0xff] }
 0x212   : > { %v698_v25 = vadd.f32 1e-05, %v694_v22  ;;  %v403_v22 = vld [vmem:[%s4161_s1 + $0x1f0] sm:$0xff] }
 0x213   : > { %v787_v26 = vadd.f32 1e-05, %v783_v24  ;;  %v689_v27 = vpop.xlane.xlu1 %688  ;;  %v459_v40 = vld [vmem:[%s4161_s1 + $0x3b0] sm:$0xff] }
 0x214   : > { %2631 = vrsqrt.f32 %v698_v25  ;;  %v695_v29 = vmul.f32 0.0078125, %v689_v27  ;;  %v778_v30 = vpop.xlane.xlu0 %777  ;;  %v466_v27 = vld [vmem:[%s4161_s1 + $0x3e8] sm:$0xff] }
 0x215   : > { %2633 = vrsqrt.f32 %v787_v26  ;;  %v784_v31 = vmul.f32 0.015625, %v778_v30  ;;  %v839_v30 = vsub.f32 %v2881_v60, %v807_v53  ;;  %v389_v53 = vld [vmem:[%s4161_s1 + $0x180] sm:$0xff] }
 0x216   : > { %v699_v32 = vadd.f32 1e-05, %v695_v29 }
 0x217   : > { %v788_v34 = vadd.f32 1e-05, %v784_v31  ;;  %v691_v35 = vpop.xlane.xlu1 %690 }
 0x218   : > { %2635 = vrsqrt.f32 %v699_v32  ;;  %v696_v37 = vmul.f32 0.0078125, %v691_v35  ;;  %v781_v36 = vpop.xlane.xlu0 %780 }
 0x219   : > { %2637 = vrsqrt.f32 %v788_v34  ;;  %v785_v41 = vmul.f32 0.015625, %v781_v36  ;;  %v465_v36 = vld [vmem:[%s4161_s1 + $0x3e0] sm:$0xff] }
 0x21a   : > { %v700_v42 = vadd.f32 1e-05, %v696_v37  ;;  %v401_v37 = vld [vmem:[%s4161_s1 + $0x1e0] sm:$0xff] }
 0x21b   : > { %v789_v48 = vadd.f32 1e-05, %v785_v41  ;;  %v693_v49 = vpop.xlane.xlu1 %692 }
 0x21c   : > { %2639 = vrsqrt.f32 %v700_v42  ;;  %v697_v52 = vmul.f32 0.0078125, %v693_v49 }
 0x21d   : > { %2641 = vrsqrt.f32 %v789_v48  ;;  %v464_v48 = vld [vmem:[%s4161_s1 + $0x3d8] sm:$0xff] }
 0x21e   : > { %v2630_v57 = vpop.eup %2629  ;;  %v701_v0 = vadd.f32 1e-05, %v697_v52 }
 0x21f   : > { %v817_v33 = vsel %vm797_vm1, %v2630_v57, 0.0 }
 0x220   : > { %2643 = vrsqrt.f32 %v701_v0  ;;  %v841_v2 = vmul.f32 %v833_v59, %v817_v33  ;;  %v399_v59 = vld [vmem:[%s4161_s1 + $0x1d0] sm:$0xff] }
 0x221   : > { %v2632_v8 = vpop.eup %2631 }
 0x222   : > { %v2634_v10 = vpop.eup %2633  ;;  %v857_v11 = vmul.f32 %v3190_v1, %v841_v2  ;;  %v840_v12 = vmul.f32 %v2632_v8, %v3003_v46  ;;  %v396_v8 = vld [vmem:[%s4161_s1 + $0x1b8] sm:$0xff] }
 0x223   : > { %v819_v39 = vsel %vm797_vm1, %v2634_v10, 0.0  ;;  %v395_v10 = vld [vmem:[%s4161_s1 + $0x1b0] sm:$0xff] }
 0x224   : > { %v873_v14 = vadd.f32 %v3195_v5, %v857_v11  ;;  %v856_v15 = vmul.f32 %v3198_v6, %v840_v12  ;;  %v843_v16 = vmul.f32 %v835_v9, %v819_v39  ;;  %v460_v9 = vld [vmem:[%s4161_s1 + $0x3b8] sm:$0xff]  ;;  %v394_v11 = vld [vmem:[%s4161_s1 + $0x1a8] sm:$0xff]  ;;  %v457_v39 = vld [vmem:[%s4161_s1 + $0x3a0] sm:$0xff] }
 0x225   : > { %v2636_v18 = vpop.eup %2635  ;;  %v458_v12 = vld [vmem:[%s4161_s1 + $0x3a8] sm:$0xff] }
 0x226   : > { %v2638_v20 = vpop.eup %2637  ;;  %2513 = vmatprep.mubr.msk.f32.mxu1 %vm744_vm0, %v873_v14  ;;  %2517 = vmatprep.mubr.msk.f32.mxu0 %vm744_vm0, %v873_v14  ;;  %v872_v43 = vadd.f32 %v3207_v13, %v856_v15  ;;  %v859_v46 = vmul.f32 %v3190_v1, %v843_v16  ;;  %v842_v21 = vmul.f32 %v2636_v18, %v3011_v58  ;;  %v402_v58 = vld [vmem:[%s4161_s1 + $0x1e8] sm:$0xff]  ;;  %v392_v14 = vld [vmem:[%s4161_s1 + $0x198] sm:$0xff]  ;;  %v391_v16 = vld [vmem:[%s4161_s1 + $0x190] sm:$0xff] }
 0x227   : > { %v821_v3 = vsel %vm797_vm1, %v2638_v20, 0.0  ;;  %v456_v15 = vld [vmem:[%s4161_s1 + $0x398] sm:$0xff]  ;;  %v455_v18 = vld [vmem:[%s4161_s1 + $0x390] sm:$0xff]  ;;  %v454_v20 = vld [vmem:[%s4161_s1 + $0x388] sm:$0xff] }
 0x228   : > { %1029 = vmatmul.mubr.f32.vlgmr.msra.gmra.mxu1 %v872_v43  ;;  %1118 = vmatmul.mubr.f32.vlgmr.msra.gmra.mxu0 %v872_v43  ;;  %v875_v24 = vadd.f32 %v3195_v5, %v859_v46  ;;  %v858_v25 = vmul.f32 %v3198_v6, %v842_v21  ;;  %v845_v26 = vmul.f32 %v837_v19, %v821_v3  ;;  %v390_v19 = vld [vmem:[%s4161_s1 + $0x188] sm:$0xff]  ;;  %v453_v43 = vld [vmem:[%s4161_s1 + $0x380] sm:$0xff]  ;;  %v388_v46 = vld [vmem:[%s4161_s1 + $0x178] sm:$0xff] }
 0x229   : > { %v2640_v29 = vpop.eup %2639  ;;  %1199 = vmatpush1.msra.mxu1 %v403_v22  ;;  %1288 = vmatpush1.msra.mxu0 %v467_v23  ;;  %v452_v21 = vld [vmem:[%s4161_s1 + $0x378] sm:$0xff]  ;;  %v387_v22 = vld [vmem:[%s4161_s1 + $0x170] sm:$0xff]  ;;  %v386_v3 = vld [vmem:[%s4161_s1 + $0x168] sm:$0xff] }
 0x22a   : > { %v2642_v31 = vpop.eup %2641  ;;  %2514 = vmatprep.mubr.msk.f32.mxu1 %vm744_vm0, %v875_v24  ;;  %2518 = vmatprep.mubr.msk.f32.mxu0 %vm744_vm0, %v875_v24  ;;  %v874_v32 = vadd.f32 %v3207_v13, %v858_v25  ;;  %v861_v34 = vmul.f32 %v3190_v1, %v845_v26  ;;  %v844_v35 = vmul.f32 %v2640_v29, %v3021_v7  ;;  %v451_v23 = vld [vmem:[%s4161_s1 + $0x370] sm:$0xff]  ;;  %v450_v24 = vld [vmem:[%s4161_s1 + $0x368] sm:$0xff]  ;;  %v385_v25 = vld [vmem:[%s4161_s1 + $0x160] sm:$0xff] }
 0x22b   : > { %v823_v41 = vsel %vm797_vm1, %v2642_v31, 0.0  ;;  %1200 = vmatprep.subr.mxu1 %v402_v58  ;;  %1289 = vmatprep.subr.mxu0 %v466_v27  ;;  %v449_v26 = vld [vmem:[%s4161_s1 + $0x360] sm:$0xff]  ;;  %v384_v58 = vld [vmem:[%s4161_s1 + $0x158] sm:$0xff]  ;;  %v383_v29 = vld [vmem:[%s4161_s1 + $0x150] sm:$0xff] }
 0x22c   : > { %1035 = vmatmul.mubr.f32.gmra.mxu1 %v874_v32  ;;  %1123 = vmatmul.mubr.f32.gmra.mxu0 %v874_v32  ;;  %v877_v42 = vadd.f32 %v3195_v5, %v861_v34  ;;  %v860_v44 = vmul.f32 %v3198_v6, %v844_v35  ;;  %v847_v7 = vmul.f32 %v839_v30, %v823_v41  ;;  %v448_v27 = vld [vmem:[%s4161_s1 + $0x358] sm:$0xff]  ;;  %v382_v30 = vld [vmem:[%s4161_s1 + $0x148] sm:$0xff]  ;;  %v381_v31 = vld [vmem:[%s4161_s1 + $0x140] sm:$0xff] }
 0x22d   : > { %v2644_v49 = vpop.eup %2643  ;;  %1201 = vmatpush1.msra.mxu1 %v401_v37  ;;  %1290 = vmatpush1.msra.mxu0 %v465_v36  ;;  %v380_v32 = vld [vmem:[%s4161_s1 + $0x138] sm:$0xff]  ;;  %v379_v34 = vld [vmem:[%s4161_s1 + $0x130] sm:$0xff]  ;;  %v378_v35 = vld [vmem:[%s4161_s1 + $0x128] sm:$0xff] }
 0x22e   : > { %2515 = vmatprep.mubr.msk.f32.mxu1 %vm744_vm0, %v877_v42  ;;  %2519 = vmatprep.mubr.msk.f32.mxu0 %vm744_vm0, %v877_v42  ;;  %v876_v52 = vadd.f32 %v3207_v13, %v860_v44  ;;  %v863_v54 = vmul.f32 %v3190_v1, %v847_v7  ;;  %v846_v57 = vmul.f32 %v2644_v49, %v3038_v17  ;;  %v398_v17 = vld [vmem:[%s4161_s1 + $0x1c8] sm:$0xff]  ;;  %v377_v37 = vld [vmem:[%s4161_s1 + $0x120] sm:$0xff]  ;;  %v376_v36 = vld [vmem:[%s4161_s1 + $0x118] sm:$0xff] }
 0x22f   : > { %1202 = vmatprep.subr.mxu1 %v400_v47  ;;  %1291 = vmatprep.subr.mxu0 %v464_v48  ;;  %v462_v1 = vld [vmem:[%s4161_s1 + $0x3c8] sm:$0xff]  ;;  %v375_v41 = vld [vmem:[%s4161_s1 + $0x110] sm:$0xff]  ;;  %v373_v44 = vld [vmem:[%s4161_s1 + $0x100] sm:$0xff] }
 0x230   : > { %1041 = vmatmul.mubr.f32.gmra.mxu1 %v876_v52  ;;  %1128 = vmatmul.mubr.f32.gmra.mxu0 %v876_v52  ;;  %v879_v0 = vadd.f32 %v3195_v5, %v863_v54  ;;  %v862_v33 = vmul.f32 %v3198_v6, %v846_v57  ;;  %v397_v5 = vld [vmem:[%s4161_s1 + $0x1c0] sm:$0xff]  ;;  %v374_v42 = vld [vmem:[%s4161_s1 + $0x108] sm:$0xff]  ;;  %v436_v7 = vld [vmem:[%s4161_s1 + $0x2f8] sm:$0xff] }
 0x231   : > { %1203 = vmatpush1.msra.mxu1 %v399_v59  ;;  %1292 = vmatpush1.msra.mxu0 %v463_v62  ;;  %v461_v6 = vld [vmem:[%s4161_s1 + $0x3c0] sm:$0xff]  ;;  %v435_v47 = vld [vmem:[%s4161_s1 + $0x2f0] sm:$0xff]  ;;  %v434_v48 = vld [vmem:[%s4161_s1 + $0x2e8] sm:$0xff] }
 0x232   : > { %2516 = vmatprep.mubr.msk.f32.mxu1 %vm744_vm0, %v879_v0  ;;  %2520 = vmatprep.mubr.msk.f32.mxu0 %vm744_vm0, %v879_v0  ;;  %v878_v2 = vadd.f32 %v3207_v13, %v862_v33  ;;  %v393_v13 = vld [vmem:[%s4161_s1 + $0x1a0] sm:$0xff]  ;;  %v432_v52 = vld [vmem:[%s4161_s1 + $0x2d8] sm:$0xff]  ;;  %v431_v54 = vld [vmem:[%s4161_s1 + $0x2d0] sm:$0xff] }
 0x233   : > { %1204 = vmatprep.subr.mxu1 %v398_v17  ;;  %1293 = vmatprep.subr.mxu0 %v462_v1  ;;  %v433_v49 = vld [vmem:[%s4161_s1 + $0x2e0] sm:$0xff]  ;;  %v430_v57 = vld [vmem:[%s4161_s1 + $0x2c8] sm:$0xff]  ;;  %v428_v62 = vld [vmem:[%s4161_s1 + $0x2b8] sm:$0xff] }
 0x234   : > { %1047 = vmatmul.mubr.f32.gmra.mxu1 %v878_v2  ;;  %1133 = vmatmul.mubr.f32.gmra.mxu0 %v878_v2  ;;  %v429_v59 = vld [vmem:[%s4161_s1 + $0x2c0] sm:$0xff]  ;;  %v427_v0 = vld [vmem:[%s4161_s1 + $0x2b0] sm:$0xff]  ;;  %v426_v33 = vld [vmem:[%s4161_s1 + $0x2a8] sm:$0xff] }
 0x235   : > { %1205 = vmatpush1.msra.mxu1 %v397_v5  ;;  %1294 = vmatpush1.msra.mxu0 %v461_v6  ;;  %v425_v17 = vld [vmem:[%s4161_s1 + $0x2a0] sm:$0xff]  ;;  %v424_v1 = vld [vmem:[%s4161_s1 + $0x298] sm:$0xff]  ;;  %v423_v2 = vld [vmem:[%s4161_s1 + $0x290] sm:$0xff] }
 0x236   : > { %1206 = vmatprep.subr.mxu1 %v396_v8  ;;  %1295 = vmatprep.subr.mxu0 %v460_v9  ;;  %v422_v5 = vld [vmem:[%s4161_s1 + $0x288] sm:$0xff]  ;;  %v421_v6 = vld [vmem:[%s4161_s1 + $0x280] sm:$0xff]  ;;  %v420_v8 = vld [vmem:[%s4161_s1 + $0x278] sm:$0xff] }
 0x237   : > { %1207 = vmatpush1.msra.mxu1 %v395_v10  ;;  %1296 = vmatpush1.msra.mxu0 %v459_v40  ;;  %v419_v9 = vld [vmem:[%s4161_s1 + $0x270] sm:$0xff]  ;;  %v418_v10 = vld [vmem:[%s4161_s1 + $0x268] sm:$0xff] }
 0x238   : > { %1208 = vmatprep.subr.mxu1 %v394_v11  ;;  %1297 = vmatprep.subr.mxu0 %v458_v12  ;;  %v447_v40 = vld [vmem:[%s4161_s1 + $0x350] sm:$0xff]  ;;  %v417_v11 = vld [vmem:[%s4161_s1 + $0x260] sm:$0xff]  ;;  %v446_v12 = vld [vmem:[%s4161_s1 + $0x348] sm:$0xff] }
 0x239   : > { %1209 = vmatpush1.msra.mxu1 %v393_v13  ;;  %1298 = vmatpush1.msra.mxu0 %v457_v39  ;;  %v416_v13 = vld [vmem:[%s4161_s1 + $0x258] sm:$0xff]  ;;  %v445_v39 = vld [vmem:[%s4161_s1 + $0x340] sm:$0xff] }
 0x23a   : > { %1210 = vmatprep.subr.mxu1 %v392_v14  ;;  %1299 = vmatprep.subr.mxu0 %v456_v15  ;;  %v415_v14 = vld [vmem:[%s4161_s1 + $0x250] sm:$0xff]  ;;  %v444_v15 = vld [vmem:[%s4161_s1 + $0x338] sm:$0xff] }
 0x23b   : > { %1211 = vmatpush1.msra.mxu1 %v391_v16  ;;  %1300 = vmatpush1.msra.mxu0 %v455_v18  ;;  %v414_v16 = vld [vmem:[%s4161_s1 + $0x248] sm:$0xff]  ;;  %v443_v18 = vld [vmem:[%s4161_s1 + $0x330] sm:$0xff] }
 0x23c   : > { %1212 = vmatprep.subr.mxu1 %v390_v19  ;;  %1301 = vmatprep.subr.mxu0 %v454_v20  ;;  %v413_v19 = vld [vmem:[%s4161_s1 + $0x240] sm:$0xff]  ;;  %v442_v20 = vld [vmem:[%s4161_s1 + $0x328] sm:$0xff] }
 0x23d   : > { %1213 = vmatpush1.msra.mxu1 %v389_v53  ;;  %1302 = vmatpush1.msra.mxu0 %v453_v43  ;;  %v412_v53 = vld [vmem:[%s4161_s1 + $0x238] sm:$0xff]  ;;  %v441_v43 = vld [vmem:[%s4161_s1 + $0x320] sm:$0xff] }
 0x23e   : > { %1214 = vmatprep.subr.mxu1 %v388_v46  ;;  %1303 = vmatprep.subr.mxu0 %v452_v21  ;;  %v411_v46 = vld [vmem:[%s4161_s1 + $0x230] sm:$0xff]  ;;  %v440_v21 = vld [vmem:[%s4161_s1 + $0x318] sm:$0xff] }
 0x23f   : > { %1215 = vmatpush1.msra.mxu1 %v387_v22  ;;  %1304 = vmatpush1.msra.mxu0 %v451_v23  ;;  %v410_v22 = vld [vmem:[%s4161_s1 + $0x228] sm:$0xff]  ;;  %v439_v23 = vld [vmem:[%s4161_s1 + $0x310] sm:$0xff] }
 0x240   : > { %1216 = vmatprep.subr.mxu1 %v386_v3  ;;  %1305 = vmatprep.subr.mxu0 %v450_v24  ;;  %v409_v3 = vld [vmem:[%s4161_s1 + $0x220] sm:$0xff]  ;;  %v438_v24 = vld [vmem:[%s4161_s1 + $0x308] sm:$0xff] }
 0x241   : > { %1217 = vmatpush1.msra.mxu1 %v385_v25  ;;  %1306 = vmatpush1.msra.mxu0 %v449_v26  ;;  %v408_v25 = vld [vmem:[%s4161_s1 + $0x218] sm:$0xff]  ;;  %v437_v26 = vld [vmem:[%s4161_s1 + $0x300] sm:$0xff] }
 0x242   : > { %1218 = vmatprep.subr.mxu1 %v384_v58  ;;  %1307 = vmatprep.subr.mxu0 %v448_v27  ;;  %v407_v58 = vld [vmem:[%s4161_s1 + $0x210] sm:$0xff]  ;;  %v406_v27 = vld [vmem:[%s4161_s1 + $0x208] sm:$0xff] }
 0x243   : > { %1219 = vmatpush1.msra.mxu1 %v383_v29  ;;  %1351 = vmatprep.mubr.f32.mxu0 %v2673_v4  ;;  %v405_v29 = vld [vmem:[%s4161_s1 + $0x200] sm:$0xff] }
 0x244   : > { %1220 = vmatprep.subr.mxu1 %v382_v30  ;;  %1308 = vmatpush1.msra.mxu0 %v447_v40 }
 0x245   : > { %1221 = vmatpush1.msra.mxu1 %v381_v31  ;;  %1309 = vmatprep.subr.mxu0 %v446_v12 }
 0x246   : > { %1222 = vmatprep.subr.mxu1 %v380_v32  ;;  %1310 = vmatpush1.msra.mxu0 %v445_v39 }
 0x247   : > { %1223 = vmatpush1.msra.mxu1 %v379_v34  ;;  %1311 = vmatprep.subr.mxu0 %v444_v15 }
 0x248   : > { %1224 = vmatprep.subr.mxu1 %v378_v35  ;;  %1312 = vmatpush1.msra.mxu0 %v443_v18 }
 0x249   : > { %1225 = vmatpush1.msra.mxu1 %v377_v37  ;;  %1313 = vmatprep.subr.mxu0 %v442_v20 }
 0x24a   : > { %1226 = vmatprep.subr.mxu1 %v376_v36  ;;  %1314 = vmatpush1.msra.mxu0 %v441_v43 }
 0x24b   : > { %1227 = vmatpush1.msra.mxu1 %v375_v41  ;;  %1315 = vmatprep.subr.mxu0 %v440_v21 }
 0x24c   : > { %1228 = vmatprep.subr.mxu1 %v374_v42  ;;  %1316 = vmatpush1.msra.mxu0 %v439_v23 }
 0x24d   : > { %1229 = vmatpush1.msra.mxu1 %v373_v44  ;;  %1317 = vmatprep.subr.mxu0 %v438_v24 }
 0x24e   : > { %1230 = vmatprep.subr.mxu1 %v436_v7  ;;  %1318 = vmatpush1.msra.mxu0 %v437_v26 }
 0x24f   : > { %1231 = vmatpush2.msra.mxu1 %v435_v47 }
 0x250   : > { %1232 = vmatprep.subr.mxu1 %v434_v48 }
 0x251   : > { %1233 = vmatpush2.msra.mxu1 %v433_v49 }
 0x252   : > { %1234 = vmatprep.subr.mxu1 %v432_v52 }
 0x253   : > { %1235 = vmatpush2.msra.mxu1 %v431_v54 }
 0x254   : > { %1236 = vmatprep.subr.mxu1 %v430_v57 }
 0x255   : > { %1237 = vmatpush2.msra.mxu1 %v429_v59 }
 0x256   : > { %1238 = vmatprep.subr.mxu1 %v428_v62 }
 0x257   : > { %1239 = vmatpush2.msra.mxu1 %v427_v0 }
 0x258   : > { %1240 = vmatprep.subr.mxu1 %v426_v33 }
 0x259   : > { %1241 = vmatpush2.msra.mxu1 %v425_v17 }
 0x25a   : > { %1242 = vmatprep.subr.mxu1 %v424_v1 }
 0x25b   : > { %1243 = vmatpush2.msra.mxu1 %v423_v2 }
 0x25c   : > { %1244 = vmatprep.subr.mxu1 %v422_v5 }
 0x25d   : > { %1245 = vmatpush2.msra.mxu1 %v421_v6 }
 0x25e   : > { %1246 = vmatprep.subr.mxu1 %v420_v8 }
 0x25f   : > { %1247 = vmatpush2.msra.mxu1 %v419_v9 }
 0x260   : > { %1248 = vmatprep.subr.mxu1 %v418_v10 }
 0x261   : > { %1249 = vmatpush2.msra.mxu1 %v417_v11 }
 0x262   : > { %1250 = vmatprep.subr.mxu1 %v416_v13 }
 0x263   : > { %1251 = vmatpush2.msra.mxu1 %v415_v14 }
 0x264   : > { %1252 = vmatprep.subr.mxu1 %v414_v16 }
 0x265   : > { %1253 = vmatpush2.msra.mxu1 %v413_v19 }
 0x266   : > { %1254 = vmatprep.subr.mxu1 %v412_v53 }
 0x267   : > { %1255 = vmatpush2.msra.mxu1 %v411_v46 }
 0x268   : > { %1256 = vmatprep.subr.mxu1 %v410_v22 }
 0x269   : > { %1257 = vmatpush2.msra.mxu1 %v409_v3 }
 0x26a   : > { %1258 = vmatprep.subr.mxu1 %v408_v25 }
 0x26b   : > { %1259 = vmatpush2.msra.mxu1 %v407_v58 }
 0x26c   : > { %1260 = vmatprep.subr.mxu1 %v406_v27 }
 0x26d   : > { %1261 = vmatpush2.msra.mxu1 %v405_v29 }
 0x2e8   : > { %v1030_v30 = vpop.f32.mrf.mxu1  ;;  %v1119_v31 = vpop.f32.mrf.mxu0 }
 0x2e9   : > { %v1138_v32 = vadd.f32 3.0, %v1030_v30  ;;  %v1140_v34 = vadd.f32 3.0, %v1119_v31 }
 0x2ea   : > { %v1032_v35 = vpop.f32.mrf.mxu1  ;;  %v1121_v37 = vpop.f32.mrf.mxu0 }
 0x2eb   : > { %v1150_v36 = vmax.f32 %v1138_v32, 0.0  ;;  %v1152_v41 = vmax.f32 %v1140_v34, 0.0  ;;  %v1139_v42 = vadd.f32 3.0, %v1032_v35 }
 0x2ec   : > { %v1036_v44 = vpop.f32.mrf.mxu1  ;;  %v1124_v7 = vpop.f32.mrf.mxu0 }
 0x2ed   : > { %v1162_v47 = vmin.f32 %v1150_v36, 6.0  ;;  %v1164_v48 = vmin.f32 %v1152_v41, 6.0  ;;  %v1151_v49 = vmax.f32 %v1139_v42, 0.0  ;;  %v1141_v52 = vadd.f32 3.0, %v1036_v44 }
 0x2ee   : > { %v1143_v54 = vadd.f32 3.0, %v1124_v7  ;;  %v1038_v57 = vpop.f32.mrf.mxu1  ;;  %v1126_v59 = vpop.f32.mrf.mxu0 }
 0x2ef   : > { %v1174_v62 = vmul.f32 %v1162_v47, %v1030_v30  ;;  %v1176_v0 = vmul.f32 %v1164_v48, %v1119_v31  ;;  %v1163_v33 = vmin.f32 %v1151_v49, 6.0  ;;  %v1153_v17 = vmax.f32 %v1141_v52, 0.0 }
 0x2f0   : > { %v1155_v1 = vmax.f32 %v1143_v54, 0.0  ;;  %v1142_v2 = vadd.f32 3.0, %v1038_v57  ;;  %v1042_v5 = vpop.f32.mrf.mxu1  ;;  %v1129_v6 = vpop.f32.mrf.mxu0 }
 0x2f1   : > { %v1188_v8 = vmul.f32 0.16666667, %v1176_v0  ;;  %v1175_v9 = vmul.f32 %v1163_v33, %v1032_v35  ;;  %v1165_v10 = vmin.f32 %v1153_v17, 6.0  ;;  %v1144_v12 = vadd.f32 3.0, %v1042_v5 }
 0x2f2   : > { %v1167_v40 = vmin.f32 %v1155_v1, 6.0  ;;  %v1154_v11 = vmax.f32 %v1142_v2, 0.0  ;;  %v1146_v13 = vadd.f32 3.0, %v1129_v6  ;;  %v1044_v39 = vpop.f32.mrf.mxu1  ;;  %v1131_v14 = vpop.f32.mrf.mxu0  ;;  %v1186_v15 = vmul.f32 0.16666667, %v1174_v62 }
 0x2f3   : > { %v1187_v16 = vmul.f32 0.16666667, %v1175_v9  ;;  %v1177_v18 = vmul.f32 %v1165_v10, %v1036_v44  ;;  %v1145_v19 = vadd.f32 3.0, %v1044_v39  ;;  %1352 = vmatmul.mubr.f32.vlgmr.msra.gmra.mxu0 %v1188_v8  ;;  %v1156_v43 = vmax.f32 %v1144_v12, 0.0 }
 0x2f4   : > { %v1179_v20 = vmul.f32 %v1167_v40, %v1124_v7  ;;  %v1166_v53 = vmin.f32 %v1154_v11, 6.0  ;;  %v1158_v46 = vmax.f32 %v1146_v13, 0.0  ;;  %v1048_v21 = vpop.f32.mrf.mxu1  ;;  %v1134_v22 = vpop.f32.mrf.mxu0  ;;  %1357 = vmatprep.mubr.f32.mxu0 %v2673_v4 }
 0x2f5   : > { %v1157_v23 = vmax.f32 %v1145_v19, 0.0  ;;  %v1147_v3 = vadd.f32 3.0, %v1048_v21  ;;  %v1149_v24 = vadd.f32 3.0, %v1134_v22  ;;  %1262 = vmatprep.mubr.f32.mxu1 %v1187_v16  ;;  %v1168_v58 = vmin.f32 %v1156_v43, 6.0 }
 0x2f6   : > { %v1191_v25 = vmul.f32 0.16666667, %v1179_v20  ;;  %v1178_v26 = vmul.f32 %v1166_v53, %v1038_v57  ;;  %v1170_v27 = vmin.f32 %v1158_v46, 6.0  ;;  %v1050_v29 = vpop.f32.mrf.mxu1  ;;  %v1136_v30 = vpop.f32.mrf.mxu0  ;;  %1263 = vmatmul.mubr.f32.vlgmr.msra.gmra.mxu1 %v1186_v15  ;;  %v1189_v37 = vmul.f32 0.16666667, %v1177_v18 }
 0x2f7   : > { %v1169_v31 = vmin.f32 %v1157_v23, 6.0  ;;  %v1159_v32 = vmax.f32 %v1147_v3, 0.0  ;;  %v1161_v34 = vmax.f32 %v1149_v24, 0.0  ;;  %v1148_v35 = vadd.f32 3.0, %v1050_v29  ;;  %v500_v30 = vld [vmem:[%s4161_s1 + $0x4f8] sm:$0xff] }
 0x2f8   : > { %v1190_v36 = vmul.f32 0.16666667, %v1178_v26  ;;  %v1180_v41 = vmul.f32 %v1168_v58, %v1042_v5  ;;  %v1182_v42 = vmul.f32 %v1170_v27, %v1129_v6  ;;  %1358 = vmatmul.mubr.f32.gmra.mxu0 %v1191_v25  ;;  %1596 = vmatprep.subr.mxu0 %v500_v30 }
 0x2f9   : > { %v1181_v44 = vmul.f32 %v1169_v31, %v1044_v39  ;;  %v1171_v7 = vmin.f32 %v1159_v32, 6.0  ;;  %v1173_v47 = vmin.f32 %v1161_v34, 6.0  ;;  %v1160_v48 = vmax.f32 %v1148_v35, 0.0  ;;  %1363 = vmatprep.mubr.f32.mxu0 %v2673_v4  ;;  %v498_v31 = vld [vmem:[%s4161_s1 + $0x4e8] sm:$0xff]  ;;  %v496_v32 = vld [vmem:[%s4161_s1 + $0x4d8] sm:$0xff]  ;;  %v495_v34 = vld [vmem:[%s4161_s1 + $0x4d0] sm:$0xff] }
 0x2fa   : > { %v1194_v49 = vmul.f32 0.16666667, %v1182_v42  ;;  %1268 = vmatprep.mubr.f32.mxu1 %v1190_v36  ;;  %v1192_v59 = vmul.f32 0.16666667, %v1180_v41  ;;  %v494_v35 = vld [vmem:[%s4161_s1 + $0x4c8] sm:$0xff]  ;;  %v492_v36 = vld [vmem:[%s4161_s1 + $0x4b8] sm:$0xff] }
 0x2fb   : > { %v1193_v52 = vmul.f32 0.16666667, %v1181_v44  ;;  %v1185_v54 = vmul.f32 %v1173_v47, %v1134_v22  ;;  %v1172_v57 = vmin.f32 %v1160_v48, 6.0  ;;  %1269 = vmatmul.mubr.f32.gmra.mxu1 %v1189_v37  ;;  %v1183_v62 = vmul.f32 %v1171_v7, %v1048_v21  ;;  %v493_v37 = vld [vmem:[%s4161_s1 + $0x4c0] sm:$0xff]  ;;  %v491_v41 = vld [vmem:[%s4161_s1 + $0x4b0] sm:$0xff]  ;;  %v490_v42 = vld [vmem:[%s4161_s1 + $0x4a8] sm:$0xff] }
 0x2fc   : > { %1364 = vmatmul.mubr.f32.gmra.mxu0 %v1194_v49  ;;  %v489_v44 = vld [vmem:[%s4161_s1 + $0x4a0] sm:$0xff]  ;;  %v488_v7 = vld [vmem:[%s4161_s1 + $0x498] sm:$0xff]  ;;  %v487_v47 = vld [vmem:[%s4161_s1 + $0x490] sm:$0xff] }
 0x2fd   : > { %v1197_v0 = vmul.f32 0.16666667, %v1185_v54  ;;  %v1184_v33 = vmul.f32 %v1172_v57, %v1050_v29  ;;  %1274 = vmatprep.mubr.f32.mxu1 %v1193_v52  ;;  %1369 = vmatprep.mubr.f32.mxu0 %v2673_v4  ;;  %v1195_v1 = vmul.f32 0.16666667, %v1183_v62  ;;  %v486_v48 = vld [vmem:[%s4161_s1 + $0x488] sm:$0xff]  ;;  %v485_v49 = vld [vmem:[%s4161_s1 + $0x480] sm:$0xff] }
 0x2fe   : > { %v484_v52 = vld [vmem:[%s4161_s1 + $0x478] sm:$0xff]  ;;  %v483_v54 = vld [vmem:[%s4161_s1 + $0x470] sm:$0xff] }
 0x2ff   : > { %v1196_v17 = vmul.f32 0.16666667, %v1184_v33  ;;  %1275 = vmatmul.mubr.f32.gmra.mxu1 %v1192_v59 }
 0x300   : > { %1370 = vmatmul.mubr.f32.gmra.mxu0 %v1197_v0 }
 0x301   : > { %1280 = vmatprep.mubr.f32.mxu1 %v1196_v17 }
 0x303   : > { %1281 = vmatmul.mubr.f32.gmra.mxu1 %v1195_v1 }
 0x3b3   : > { %v1353_v2 = vpop.f32.mrf.mxu0 }
 0x3b5   : > { %v1355_v5 = vpop.f32.mrf.mxu0 }
 0x3b6   : > { %v1264_v6 = vpop.f32.mrf.mxu1 }
 0x3b7   : > { %v1354_v8 = vadd.f32 %v1353_v2, %v1264_v6 }
 0x3b8   : > { %v1359_v9 = vpop.f32.mrf.mxu0  ;;  %v1266_v10 = vpop.f32.mrf.mxu1 }
 0x3b9   : > { %v3533_v40 = vadd.f32 %v1354_v8, %v2869_v51  ;;  %v1356_v11 = vadd.f32 %v1355_v5, %v1266_v10 }
 0x3ba   : > { %v1361_v12 = vpop.f32.mrf.mxu0 }
 0x3bb   : > { %v3536_v13 = vadd.f32 %v1356_v11, %v2862_v45  ;;  %v1270_v39 = vpop.f32.mrf.mxu1  ;;  %1384 = vadd.xlane.f32.xlu1 %v3533_v40 }
 0x3bc   : > { %v1360_v14 = vadd.f32 %v1359_v9, %v1270_v39  ;;  %v1365_v15 = vpop.f32.mrf.mxu0 }
 0x3bd   : > { %v1272_v16 = vpop.f32.mrf.mxu1  ;;  %v1456_v18 = vsel %vm744_vm0, %v3536_v13, 0.0 }
 0x3be   : > { %v3542_v19 = vadd.f32 %v1360_v14, %v2876_v56  ;;  %v1362_v20 = vadd.f32 %v1361_v12, %v1272_v16  ;;  %v1367_v51 = vpop.f32.mrf.mxu0  ;;  %1457 = vadd.xlane.f32.xlu0 %v1456_v18 }
 0x3bf   : > { %v1276_v53 = vpop.f32.mrf.mxu1 }
 0x3c0   : > { %v3545_v43 = vadd.f32 %v1362_v20, %v2867_v50  ;;  %v1366_v45 = vadd.f32 %v1365_v15, %v1276_v53  ;;  %1386 = vadd.xlane.f32.xlu1 %v3542_v19  ;;  %v1371_v46 = vpop.f32.mrf.mxu0 }
 0x3c1   : > { %v1278_v21 = vpop.f32.mrf.mxu1 }
 0x3c2   : > { %v3549_v22 = vadd.f32 %v1366_v45, %v2883_v61  ;;  %v1368_v23 = vadd.f32 %v1367_v51, %v1278_v21  ;;  %v1459_v56 = vsel %vm744_vm0, %v3545_v43, 0.0  ;;  %v1373_v50 = vpop.f32.mrf.mxu0 }
 0x3c3   : > { %1460 = vadd.xlane.f32.xlu0 %v1459_v56  ;;  %v1282_v3 = vpop.f32.mrf.mxu1 }
 0x3c4   : > { %v3554_v24 = vadd.f32 %v1368_v23, %v2874_v55  ;;  %v1372_v25 = vadd.f32 %v1371_v46, %v1282_v3  ;;  %1388 = vadd.xlane.f32.xlu1 %v3549_v22 }
 0x3c5   : > { %v1284_v26 = vpop.f32.mrf.mxu1 }
 0x3c6   : > { %v3558_v58 = vadd.f32 %v1372_v25, %v2888_v63  ;;  %v1374_v27 = vadd.f32 %v1373_v50, %v1284_v26  ;;  %v1462_v61 = vsel %vm744_vm0, %v3554_v24, 0.0  ;;  %v499_v63 = vld [vmem:[%s4161_s1 + $0x4f0] sm:$0xff]  ;;  %v482_v26 = vld [vmem:[%s4161_s1 + $0x468] sm:$0xff] }
 0x3c7   : > { %1463 = vadd.xlane.f32.xlu0 %v1462_v61  ;;  %1597 = vmatpush1.msra.mxu0 %v499_v63  ;;  %v481_v61 = vld [vmem:[%s4161_s1 + $0x460] sm:$0xff]  ;;  %v480_v63 = vld [vmem:[%s4161_s1 + $0x458] sm:$0xff] }
 0x3c8   : > { %v3563_v29 = vadd.f32 %v1374_v27, %v2881_v60  ;;  %1390 = vadd.xlane.f32.xlu1 %v3558_v58  ;;  %v497_v60 = vld [vmem:[%s4161_s1 + $0x4e0] sm:$0xff]  ;;  %1598 = vmatprep.subr.mxu0 %v498_v31  ;;  %v479_v31 = vld [vmem:[%s4161_s1 + $0x450] sm:$0xff] }
 0x3c9   : > { %1599 = vmatpush1.msra.mxu0 %v497_v60 }
 0x3ca   : > { %v1465_v55 = vsel %vm744_vm0, %v3563_v29, 0.0  ;;  %1600 = vmatprep.subr.mxu0 %v496_v32  ;;  %v478_v32 = vld [vmem:[%s4161_s1 + $0x448] sm:$0xff] }
 0x3cb   : > { %1466 = vadd.xlane.f32.xlu0 %v1465_v55  ;;  %1601 = vmatpush1.msra.mxu0 %v495_v34  ;;  %v477_v34 = vld [vmem:[%s4161_s1 + $0x440] sm:$0xff] }
 0x3cc   : > { %1602 = vmatprep.subr.mxu0 %v494_v35 }
 0x3cd   : > { %1603 = vmatpush1.msra.mxu0 %v493_v37  ;;  %v476_v37 = vld [vmem:[%s4161_s1 + $0x438] sm:$0xff] }
 0x3ce   : > { %1604 = vmatprep.subr.mxu0 %v492_v36  ;;  %v475_v36 = vld [vmem:[%s4161_s1 + $0x430] sm:$0xff] }
 0x3cf   : > { %1605 = vmatpush1.msra.mxu0 %v491_v41  ;;  %v474_v41 = vld [vmem:[%s4161_s1 + $0x428] sm:$0xff] }
 0x3d0   : > { %1606 = vmatprep.subr.mxu0 %v490_v42  ;;  %v473_v42 = vld [vmem:[%s4161_s1 + $0x420] sm:$0xff] }
 0x3d1   : > { %1607 = vmatpush1.msra.mxu0 %v489_v44  ;;  %v472_v44 = vld [vmem:[%s4161_s1 + $0x418] sm:$0xff] }
 0x3d2   : > { %1608 = vmatprep.subr.mxu0 %v488_v7  ;;  %v471_v7 = vld [vmem:[%s4161_s1 + $0x410] sm:$0xff] }
 0x3d3   : > { %1609 = vmatpush1.msra.mxu0 %v487_v47  ;;  %v470_v47 = vld [vmem:[%s4161_s1 + $0x408] sm:$0xff] }
 0x3d4   : > { %1610 = vmatprep.subr.mxu0 %v486_v48  ;;  %v469_v48 = vld [vmem:[%s4161_s1 + $0x400] sm:$0xff] }
 0x3d5   : > { %1611 = vmatpush1.msra.mxu0 %v485_v49  ;;  %v516_v49 = vld [vmem:[%s4161_s1 + $0x578] sm:$0xff] }
 0x3d6   : > { %1612 = vmatprep.subr.mxu0 %v484_v52  ;;  %v515_v52 = vld [vmem:[%s4161_s1 + $0x570] sm:$0xff] }
 0x3d7   : > { %1613 = vmatpush1.msra.mxu0 %v483_v54  ;;  %v514_v54 = vld [vmem:[%s4161_s1 + $0x568] sm:$0xff] }
 0x3d8   : > { %1614 = vmatprep.subr.mxu0 %v482_v26  ;;  %v538_v26 = vld [vmem:[%s4161_s1 + $0x628] sm:$0xff] }
 0x3d9   : > { %1615 = vmatpush1.msra.mxu0 %v481_v61  ;;  %v536_v61 = vld [vmem:[%s4161_s1 + $0x618] sm:$0xff] }
 0x3da   : > { %1616 = vmatprep.subr.mxu0 %v480_v63  ;;  %v533_v63 = vld [vmem:[%s4161_s1 + $0x600] sm:$0xff] }
 0x3db   : > { %1617 = vmatpush1.msra.mxu0 %v479_v31  ;;  %v532_v31 = vld [vmem:[%s4161_s1 + $0x5f8] sm:$0xff] }
 0x3dc   : > { %1618 = vmatprep.subr.mxu0 %v478_v32  ;;  %v530_v32 = vld [vmem:[%s4161_s1 + $0x5e8] sm:$0xff] }
 0x3dd   : > { %1619 = vmatpush1.msra.mxu0 %v477_v34  ;;  %v529_v34 = vld [vmem:[%s4161_s1 + $0x5e0] sm:$0xff] }
 0x3de   : > { %1620 = vmatprep.subr.mxu0 %v476_v37  ;;  %v527_v37 = vld [vmem:[%s4161_s1 + $0x5d0] sm:$0xff] }
 0x3df   : > { %1621 = vmatpush1.msra.mxu0 %v475_v36  ;;  %v526_v36 = vld [vmem:[%s4161_s1 + $0x5c8] sm:$0xff] }
 0x3e0   : > { %1622 = vmatprep.subr.mxu0 %v474_v41  ;;  %v525_v41 = vld [vmem:[%s4161_s1 + $0x5c0] sm:$0xff] }
 0x3e1   : > { %1623 = vmatpush1.msra.mxu0 %v473_v42  ;;  %v524_v42 = vld [vmem:[%s4161_s1 + $0x5b8] sm:$0xff] }
 0x3e2   : > { %1624 = vmatprep.subr.mxu0 %v472_v44  ;;  %v523_v44 = vld [vmem:[%s4161_s1 + $0x5b0] sm:$0xff] }
 0x3e3   : > { %1625 = vmatpush1.msra.mxu0 %v471_v7  ;;  %v522_v7 = vld [vmem:[%s4161_s1 + $0x5a8] sm:$0xff] }
 0x3e4   : > { %1626 = vmatprep.subr.mxu0 %v470_v47  ;;  %v521_v47 = vld [vmem:[%s4161_s1 + $0x5a0] sm:$0xff] }
 0x3e5   : > { %1627 = vmatpush1.msra.mxu0 %v469_v48  ;;  %v520_v48 = vld [vmem:[%s4161_s1 + $0x598] sm:$0xff] }
 0x3e6   : > { %1644 = vmatprep.subr.mxu0 %v516_v49  ;;  %v519_v49 = vld [vmem:[%s4161_s1 + $0x590] sm:$0xff] }
 0x3e7   : > { %1645 = vmatpush2.msra.mxu0 %v515_v52  ;;  %v518_v52 = vld [vmem:[%s4161_s1 + $0x588] sm:$0xff] }
 0x3e8   : > { %1646 = vmatprep.subr.mxu0 %v514_v54  ;;  %v517_v54 = vld [vmem:[%s4161_s1 + $0x580] sm:$0xff] }
 0x444   : > { %v1385_v57 = vpop.xlane.xlu1 %1384 }
 0x445   : > { %v1392_v59 = vmul.f32 0.0078125, %v1385_v57  ;;  %v513_v57 = vld [vmem:[%s4161_s1 + $0x560] sm:$0xff] }
 0x446   : > { %1647 = vmatpush2.msra.mxu0 %v513_v57  ;;  %v564_v57 = vld [vmem:[%s4161_s1 + $0x6f8] sm:$0xff] }
 0x447   : > { %v3623_v62 = vsub.f32 %v3533_v40, %v1392_v59  ;;  %v1458_v0 = vpop.xlane.xlu0 %1457  ;;  %v512_v59 = vld [vmem:[%s4161_s1 + $0x558] sm:$0xff] }
 0x448   : > { %v3625_v33 = vmul.f32 0.015625, %v1458_v0  ;;  %1648 = vmatprep.subr.mxu0 %v512_v59  ;;  %v511_v0 = vld [vmem:[%s4161_s1 + $0x550] sm:$0xff] }
 0x449   : > { %v1387_v17 = vpop.xlane.xlu1 %1386  ;;  %v1400_v1 = vmul.f32 %v3623_v62, %v3623_v62  ;;  %1649 = vmatpush2.msra.mxu0 %v511_v0  ;;  %v563_v59 = vld [vmem:[%s4161_s1 + $0x6f0] sm:$0xff] }
 0x44a   : > { %v1472_v2 = vsub.f32 %v3536_v13, %v3625_v33  ;;  %v1393_v5 = vmul.f32 0.0078125, %v1387_v17  ;;  %v510_v17 = vld [vmem:[%s4161_s1 + $0x548] sm:$0xff] }
 0x44b   : > { %1404 = vadd.xlane.f32.xlu1 %v1400_v1  ;;  %v509_v1 = vld [vmem:[%s4161_s1 + $0x540] sm:$0xff]  ;;  %1650 = vmatprep.subr.mxu0 %v510_v17 }
 0x44c   : > { %v3632_v6 = vsub.f32 %v3542_v19, %v1393_v5  ;;  %v1461_v8 = vpop.xlane.xlu0 %1460  ;;  %v1476_v9 = vmul.f32 %v1472_v2, %v1472_v2  ;;  %v508_v2 = vld [vmem:[%s4161_s1 + $0x538] sm:$0xff]  ;;  %v507_v5 = vld [vmem:[%s4161_s1 + $0x530] sm:$0xff]  ;;  %1651 = vmatpush2.msra.mxu0 %v509_v1 }
 0x44d   : > { %v3634_v10 = vmul.f32 0.015625, %v1461_v8  ;;  %v1389_v11 = vpop.xlane.xlu1 %1388  ;;  %v506_v8 = vld [vmem:[%s4161_s1 + $0x528] sm:$0xff]  ;;  %1652 = vmatprep.subr.mxu0 %v508_v2 }
 0x44e   : > { %v1394_v12 = vmul.f32 0.0078125, %v1389_v11  ;;  %v1401_v39 = vmul.f32 %v3632_v6, %v3632_v6  ;;  %v1480_v14 = vsel %vm744_vm0, %v1476_v9, 0.0  ;;  %v505_v9 = vld [vmem:[%s4161_s1 + $0x520] sm:$0xff]  ;;  %1653 = vmatpush2.msra.mxu0 %v507_v5  ;;  %v504_v11 = vld [vmem:[%s4161_s1 + $0x518] sm:$0xff] }
 0x44f   : > { %v1473_v15 = vsub.f32 %v3545_v43, %v3634_v10  ;;  %1481 = vadd.xlane.f32.xlu0 %v1480_v14  ;;  %1654 = vmatprep.subr.mxu0 %v506_v8  ;;  %v501_v14 = vld [vmem:[%s4161_s1 + $0x500] sm:$0xff] }
 0x450   : > { %v3642_v16 = vsub.f32 %v3549_v22, %v1394_v12  ;;  %v1464_v18 = vpop.xlane.xlu0 %1463  ;;  %1406 = vadd.xlane.f32.xlu1 %v1401_v39  ;;  %v503_v12 = vld [vmem:[%s4161_s1 + $0x510] sm:$0xff]  ;;  %1655 = vmatpush2.msra.mxu0 %v505_v9  ;;  %v502_v39 = vld [vmem:[%s4161_s1 + $0x508] sm:$0xff] }
 0x451   : > { %v3644_v20 = vmul.f32 0.015625, %v1464_v18  ;;  %v1391_v51 = vpop.xlane.xlu1 %1390  ;;  %v1477_v53 = vmul.f32 %v1473_v15, %v1473_v15  ;;  %1656 = vmatprep.subr.mxu0 %v504_v11  ;;  %v548_v15 = vld [vmem:[%s4161_s1 + $0x678] sm:$0xff]  ;;  %v547_v18 = vld [vmem:[%s4161_s1 + $0x670] sm:$0xff] }
 0x452   : > { %v1395_v45 = vmul.f32 0.0078125, %v1391_v51  ;;  %v1402_v46 = vmul.f32 %v3642_v16, %v3642_v16  ;;  %1657 = vmatpush2.msra.mxu0 %v503_v12  ;;  %v546_v51 = vld [vmem:[%s4161_s1 + $0x668] sm:$0xff]  ;;  %1737 = vmatprep.subr.mxu1 %v548_v15 }
 0x453   : > { %v1474_v21 = vsub.f32 %v3554_v24, %v3644_v20  ;;  %v1483_v23 = vsel %vm744_vm0, %v1477_v53, 0.0  ;;  %1658 = vmatprep.subr.mxu0 %v502_v39  ;;  %v545_v53 = vld [vmem:[%s4161_s1 + $0x660] sm:$0xff]  ;;  %1738 = vmatpush1.msra.mxu1 %v547_v18 }
 0x454   : > { %v3652_v56 = vsub.f32 %v3558_v58, %v1395_v45  ;;  %1408 = vadd.xlane.f32.xlu1 %v1402_v46  ;;  %1484 = vadd.xlane.f32.xlu0 %v1483_v23  ;;  %v1467_v3 = vpop.xlane.xlu0 %1466  ;;  %v544_v45 = vld [vmem:[%s4161_s1 + $0x658] sm:$0xff]  ;;  %v543_v46 = vld [vmem:[%s4161_s1 + $0x650] sm:$0xff]  ;;  %v541_v23 = vld [vmem:[%s4161_s1 + $0x640] sm:$0xff] }
 0x455   : > { %v3654_v25 = vmul.f32 0.015625, %v1467_v3  ;;  %v1478_v50 = vmul.f32 %v1474_v21, %v1474_v21  ;;  %1659 = vmatpush2.msra.mxu0 %v501_v14  ;;  %1739 = vmatprep.subr.mxu1 %v546_v51  ;;  %v542_v21 = vld [vmem:[%s4161_s1 + $0x648] sm:$0xff]  ;;  %v540_v3 = vld [vmem:[%s4161_s1 + $0x638] sm:$0xff] }
 0x456   : > { %v1403_v27 = vmul.f32 %v3652_v56, %v3652_v56  ;;  %1874 = vmatprep.subr.mxu0 %v2673_v4  ;;  %1740 = vmatpush1.msra.mxu1 %v545_v53 }
 0x457   : > { %v1475_v55 = vsub.f32 %v3563_v29, %v3654_v25  ;;  %v1486_v30 = vsel %vm744_vm0, %v1478_v50, 0.0  ;;  %1741 = vmatprep.subr.mxu1 %v544_v45  ;;  %v539_v50 = vld [vmem:[%s4161_s1 + $0x630] sm:$0xff] }
 0x458   : > { %1410 = vadd.xlane.f32.xlu1 %v1403_v27  ;;  %1487 = vadd.xlane.f32.xlu0 %v1486_v30  ;;  %v537_v27 = vld [vmem:[%s4161_s1 + $0x620] sm:$0xff]  ;;  %v534_v30 = vld [vmem:[%s4161_s1 + $0x608] sm:$0xff] }
 0x459   : > { %v1479_v60 = vmul.f32 %v1475_v55, %v1475_v55  ;;  %1742 = vmatpush1.msra.mxu1 %v543_v46  ;;  %v535_v55 = vld [vmem:[%s4161_s1 + $0x610] sm:$0xff] }
 0x45a   : > { %1743 = vmatprep.subr.mxu1 %v542_v21 }
 0x45b   : > { %v1489_v35 = vsel %vm744_vm0, %v1479_v60, 0.0  ;;  %1744 = vmatpush1.msra.mxu1 %v541_v23  ;;  %v531_v60 = vld [vmem:[%s4161_s1 + $0x5f0] sm:$0xff] }
 0x45c   : > { %1490 = vadd.xlane.f32.xlu0 %v1489_v35  ;;  %1745 = vmatprep.subr.mxu1 %v540_v3  ;;  %v528_v35 = vld [vmem:[%s4161_s1 + $0x5d8] sm:$0xff] }
 0x45d   : > { %1746 = vmatpush1.msra.mxu1 %v539_v50 }
 0x45e   : > { %1747 = vmatprep.subr.mxu1 %v538_v26 }
 0x45f   : > { %1748 = vmatpush1.msra.mxu1 %v537_v27  ;;  %v1554_v27 = vsub.s32 3, %v2848_v38 }
 0x460   : > { %1749 = vmatprep.subr.mxu1 %v536_v61 }
 0x461   : > { %1750 = vmatpush1.msra.mxu1 %v535_v55 }
 0x462   : > { %1751 = vmatprep.subr.mxu1 %v534_v30  ;;  %v1505_v30 = vsel %vm797_vm1, %v3625_v33, 0.0  ;;  %v2664_v33 = vld [vmem:[%s4164_s4 + $0x8] sm:$0x7f] }
 0x463   : > { %1752 = vmatpush1.msra.mxu1 %v533_v63 }
 0x464   : > { %1753 = vmatprep.subr.mxu1 %v532_v31 }
 0x465   : > { %1754 = vmatpush1.msra.mxu1 %v531_v60  ;;  %v3863_v60 = vld [vmem:[%s4164_s4] sm:$0x7f] }
 0x466   : > { %1755 = vmatprep.subr.mxu1 %v530_v32  ;;  %v1555_v32 = vrot.slane %v3863_v60, %v1554_v27 }
 0x467   : > { %1756 = vmatpush1.msra.mxu1 %v529_v34  ;;  %v1570_v34 = vsub.s32 4, %v2848_v38 }
 0x468   : > { %1757 = vmatprep.subr.mxu1 %v528_v35 }
 0x469   : > { %1758 = vmatpush1.msra.mxu1 %v527_v37  ;;  %v1537_v37 = vsub.f32 %v3536_v13, %v1505_v30  ;;  %v559_v30 = vld [vmem:[%s4161_s1 + $0x6d0] sm:$0xff] }
 0x46a   : > { %1759 = vmatprep.subr.mxu1 %v526_v36  ;;  %v1559_v36 = vrot.slane %v2664_v33, %v1554_v27 }
 0x46b   : > { %1760 = vmatpush1.msra.mxu1 %v525_v41 }
 0x46c   : > { %1761 = vmatprep.subr.mxu1 %v524_v42 }
 0x46d   : > { %1762 = vmatpush1.msra.mxu1 %v523_v44  ;;  %v1575_v44 = vrot.slane %v2664_v33, %v1570_v34  ;;  %v552_v33 = vld [vmem:[%s4161_s1 + $0x698] sm:$0xff] }
 0x46e   : > { %1763 = vmatprep.subr.mxu1 %v522_v7  ;;  %v1507_v7 = vsel %vm797_vm1, %v3634_v10, 0.0 }
 0x46f   : > { %1764 = vmatpush1.msra.mxu1 %v521_v47  ;;  %v1571_v47 = vrot.slane %v3863_v60, %v1570_v34  ;;  %v555_v34 = vld [vmem:[%s4161_s1 + $0x6b0] sm:$0xff] }
 0x470   : > { %1765 = vmatprep.subr.mxu1 %v520_v48 }
 0x471   : > { %1766 = vmatpush1.msra.mxu1 %v519_v49 }
 0x472   : > { %1767 = vmatprep.subr.mxu1 %v518_v52 }
 0x473   : > { %1768 = vmatpush1.msra.mxu1 %v517_v54 }
 0x474   : > { %1785 = vmatprep.subr.mxu1 %v564_v57 }
 0x475   : > { %1786 = vmatpush2.msra.mxu1 %v563_v59  ;;  %v1539_v59 = vsub.f32 %v3545_v43, %v1507_v7  ;;  %v1847_v7 = vld [vmem:[%s4163_s3 + $0x68] sm:$0xff] }
 0x4d4   : > { %v1405_v0 = vpop.xlane.xlu1 %1404 }
 0x4d5   : > { %v1412_v17 = vmul.f32 0.0078125, %v1405_v0 }
 0x4d7   : > { %v1416_v1 = vadd.f32 1e-05, %v1412_v17  ;;  %v1509_v17 = vsel %vm797_vm1, %v3644_v20, 0.0 }
 0x4d8   : > { %v1482_v2 = vpop.xlane.xlu0 %1481 }
 0x4d9   : > { %2645 = vrsqrt.f32 %v1416_v1  ;;  %v1407_v5 = vpop.xlane.xlu1 %1406  ;;  %v1492_v8 = vmul.f32 0.015625, %v1482_v2 }
 0x4da   : > { %v1413_v9 = vmul.f32 0.0078125, %v1407_v5 }
 0x4db   : > { %v1496_v11 = vadd.f32 1e-05, %v1492_v8 }
 0x4dc   : > { %v1417_v12 = vadd.f32 1e-05, %v1413_v9 }
 0x4dd   : > { %2647 = vrsqrt.f32 %v1496_v11  ;;  %v1409_v39 = vpop.xlane.xlu1 %1408  ;;  %v1485_v14 = vpop.xlane.xlu0 %1484  ;;  %v1541_v11 = vsub.f32 %v3554_v24, %v1509_v17  ;;  %v1838_v17 = vld [vmem:[%s4163_s3 + $0x20] sm:$0xff] }
 0x4de   : > { %v1414_v15 = vmul.f32 0.0078125, %v1409_v39  ;;  %v1493_v18 = vmul.f32 0.015625, %v1485_v14  ;;  %2649 = vrsqrt.f32 %v1417_v12  ;;  %v1511_v12 = vsel %vm797_vm1, %v3654_v25, 0.0 }
 0x4e0   : > { %v1418_v51 = vadd.f32 1e-05, %v1414_v15  ;;  %v1497_v53 = vadd.f32 1e-05, %v1493_v18 }
 0x4e1   : > { %v1411_v45 = vpop.xlane.xlu1 %1410  ;;  %v1488_v46 = vpop.xlane.xlu0 %1487 }
 0x4e2   : > { %2651 = vrsqrt.f32 %v1418_v51  ;;  %v1415_v21 = vmul.f32 0.0078125, %v1411_v45  ;;  %v1494_v23 = vmul.f32 0.015625, %v1488_v46  ;;  %v1543_v51 = vsub.f32 %v3563_v29, %v1511_v12  ;;  %v1853_v12 = vld [vmem:[%s4163_s3 + $0x98] sm:$0xff] }
 0x4e3   : > { %2653 = vrsqrt.f32 %v1497_v53 }
 0x4e4   : > { %v1419_v3 = vadd.f32 1e-05, %v1415_v21  ;;  %v1498_v50 = vadd.f32 1e-05, %v1494_v23 }
 0x4e5   : > { %v1491_v26 = vpop.xlane.xlu0 %1490 }
 0x4e6   : > { %v2646_v61 = vpop.eup %2645  ;;  %2655 = vrsqrt.f32 %v1419_v3  ;;  %v1495_v55 = vmul.f32 0.015625, %v1491_v26 }
 0x4e7   : > { %2657 = vrsqrt.f32 %v1498_v50  ;;  %v1544_v31 = vmul.f32 %v2646_v61, %v3623_v62 }
 0x4e8   : > { %v1499_v63 = vadd.f32 1e-05, %v1495_v55  ;;  %v560_v55 = vld [vmem:[%s4161_s1 + $0x6d8] sm:$0xff] }
 0x4e9   : > { %v1560_v48 = vmul.f32 %v1555_v32, %v1544_v31  ;;  %v557_v31 = vld [vmem:[%s4161_s1 + $0x6c0] sm:$0xff] }
 0x4ea   : > { %v2648_v35 = vpop.eup %2647  ;;  %2659 = vrsqrt.f32 %v1499_v63  ;;  %v558_v63 = vld [vmem:[%s4161_s1 + $0x6c8] sm:$0xff] }
 0x4eb   : > { %v1521_v62 = vsel %vm797_vm1, %v2648_v35, 0.0  ;;  %v2650_v41 = vpop.eup %2649  ;;  %v1576_v1 = vadd.f32 %v1571_v47, %v1560_v48  ;;  %v554_v35 = vld [vmem:[%s4161_s1 + $0x6a8] sm:$0xff]  ;;  %v1845_v48 = vld [vmem:[%s4163_s3 + $0x58] sm:$0xff] }
 0x4ec   : > { %v1545_v42 = vmul.f32 %v1537_v37, %v1521_v62  ;;  %v1546_v54 = vmul.f32 %v2650_v41, %v3632_v6  ;;  %v553_v37 = vld [vmem:[%s4161_s1 + $0x6a0] sm:$0xff]  ;;  %v550_v62 = vld [vmem:[%s4161_s1 + $0x688] sm:$0xff] }
 0x4ed   : > { %v549_v41 = vld [vmem:[%s4161_s1 + $0x680] sm:$0xff] }
 0x4ee   : > { %v1561_v49 = vmul.f32 %v1559_v36, %v1545_v42  ;;  %v1562_v8 = vmul.f32 %v1555_v32, %v1546_v54  ;;  %v1849_v42 = vld [vmem:[%s4163_s3 + $0x78] sm:$0xff]  ;;  %v1842_v54 = vld [vmem:[%s4163_s3 + $0x40] sm:$0xff] }
 0x4ef   : > { %v2652_v52 = vpop.eup %2651 }
 0x4f0   : > { %v2654_v57 = vpop.eup %2653  ;;  %v1577_v0 = vadd.f32 %v1575_v44, %v1561_v49  ;;  %v1548_v6 = vmul.f32 %v2652_v52, %v3642_v16  ;;  %v1578_v53 = vadd.f32 %v1571_v47, %v1562_v8  ;;  %v1844_v49 = vld [vmem:[%s4163_s3 + $0x50] sm:$0xff]  ;;  %v1843_v52 = vld [vmem:[%s4163_s3 + $0x48] sm:$0xff]  ;;  %v1857_v8 = vld [vmem:[%s4163_s3 + $0xb8] sm:$0xff] }
 0x4f1   : > { %v1523_v2 = vsel %vm797_vm1, %v2654_v57, 0.0  ;;  %v1841_v57 = vld [vmem:[%s4163_s3 + $0x38] sm:$0xff] }
 0x4f2   : > { %2521 = vmatprep.mubr.msk.f32.mxu0 %vm744_vm0, %v1577_v0  ;;  %v1547_v10 = vmul.f32 %v1539_v59, %v1523_v2  ;;  %v1564_v45 = vmul.f32 %v1555_v32, %v1548_v6  ;;  %v1840_v59 = vld [vmem:[%s4163_s3 + $0x30] sm:$0xff]  ;;  %v1839_v0 = vld [vmem:[%s4163_s3 + $0x28] sm:$0xff] }
 0x4f3   : > { %v2656_v5 = vpop.eup %2655  ;;  %1661 = vmatmul.mubr.f32.vlgmr.msra.gmra.mxu0 %v1576_v1  ;;  %v1837_v1 = vld [vmem:[%s4163_s3 + $0x18] sm:$0xff]  ;;  %v1836_v2 = vld [vmem:[%s4163_s3 + $0x10] sm:$0xff] }
 0x4f4   : > { %v2658_v9 = vpop.eup %2657  ;;  %v1563_v20 = vmul.f32 %v1559_v36, %v1547_v10  ;;  %v1550_v16 = vmul.f32 %v2656_v5, %v3652_v56  ;;  %v1580_v3 = vadd.f32 %v1571_v47, %v1564_v45  ;;  %v562_v56 = vld [vmem:[%s4161_s1 + $0x6e8] sm:$0xff]  ;;  %1875 = vmatpush1.msra.mxu0 %v1849_v42  ;;  %v1834_v5 = vld [vmem:[%s4163_s3] sm:$0xff]  ;;  %v1856_v6 = vld [vmem:[%s4163_s3 + $0xb0] sm:$0xff] }
 0x4f5   : > { %v1525_v39 = vsel %vm797_vm1, %v2658_v9, 0.0  ;;  %1787 = vmatprep.subr.mxu1 %v562_v56  ;;  %1876 = vmatprep.subr.mxu0 %v2673_v4  ;;  %v1835_v10 = vld [vmem:[%s4163_s3 + $0x8] sm:$0xff] }
 0x4f6   : > { %v1579_v14 = vadd.f32 %v1575_v44, %v1563_v20  ;;  %v1549_v15 = vmul.f32 %v1541_v11, %v1525_v39  ;;  %v1566_v26 = vmul.f32 %v1555_v32, %v1550_v16  ;;  %1788 = vmatpush2.msra.mxu1 %v561_v28  ;;  %v556_v32 = vld [vmem:[%s4161_s1 + $0x6b8] sm:$0xff]  ;;  %v1855_v9 = vld [vmem:[%s4163_s3 + $0xa8] sm:$0xff]  ;;  %v1854_v11 = vld [vmem:[%s4163_s3 + $0xa0] sm:$0xff] }
 0x4f7   : > { %v2660_v18 = vpop.eup %2659  ;;  %1789 = vmatprep.subr.mxu1 %v560_v55 }
 0x4f8   : > { %2522 = vmatprep.mubr.msk.f32.mxu0 %vm744_vm0, %v1579_v14  ;;  %v1565_v46 = vmul.f32 %v1559_v36, %v1549_v15  ;;  %v1527_v21 = vsel %vm797_vm1, %v2660_v18, 0.0  ;;  %v1582_v61 = vadd.f32 %v1571_v47, %v1566_v26  ;;  %1790 = vmatpush2.msra.mxu1 %v559_v30  ;;  %v1846_v47 = vld [vmem:[%s4163_s3 + $0x60] sm:$0xff] }
 0x4f9   : > { %1667 = vmatmul.mubr.f32.gmra.mxu0 %v1578_v53  ;;  %v1551_v25 = vmul.f32 %v1543_v51, %v1527_v21  ;;  %1791 = vmatprep.subr.mxu1 %v558_v63 }
 0x4fa   : > { %v1581_v23 = vadd.f32 %v1575_v44, %v1565_v46  ;;  %1792 = vmatpush2.msra.mxu1 %v557_v31 }
 0x4fb   : > { %v1567_v50 = vmul.f32 %v1559_v36, %v1551_v25  ;;  %1793 = vmatprep.subr.mxu1 %v556_v32  ;;  %v551_v36 = vld [vmem:[%s4161_s1 + $0x690] sm:$0xff] }
 0x4fc   : > { %2523 = vmatprep.mubr.msk.f32.mxu0 %vm744_vm0, %v1581_v23  ;;  %1794 = vmatpush2.msra.mxu1 %v555_v34 }
 0x4fd   : > { %1673 = vmatmul.mubr.f32.gmra.mxu0 %v1580_v3  ;;  %v1583_v27 = vadd.f32 %v1575_v44, %v1567_v50  ;;  %1795 = vmatprep.subr.mxu1 %v554_v35  ;;  %v1848_v44 = vld [vmem:[%s4163_s3 + $0x70] sm:$0xff] }
 0x4fe   : > { %1796 = vmatpush2.msra.mxu1 %v553_v37  ;;  %1877 = vmatpush1.msra.mxu0 %v1848_v44 }
 0x4ff   : > { %2524 = vmatprep.mubr.msk.f32.mxu0 %vm744_vm0, %v1583_v27  ;;  %1797 = vmatprep.subr.mxu1 %v552_v33 }
 0x500   : > { %1798 = vmatpush2.msra.mxu1 %v551_v36  ;;  %1878 = vmatprep.subr.mxu0 %v2673_v4 }
 0x501   : > { %1679 = vmatmul.mubr.f32.gmra.mxu0 %v1582_v61  ;;  %1799 = vmatprep.subr.mxu1 %v550_v62 }
 0x502   : > { %1800 = vmatpush2.msra.mxu1 %v549_v41  ;;  %1879 = vmatpush1.msra.mxu0 %v1847_v7 }
 0x503   : > { %2579 = vmatprep.subr.mxu1 %v2673_v4  ;;  %1880 = vmatprep.subr.mxu0 %v2673_v4 }
 0x504   : > { %1881 = vmatpush1.msra.mxu0 %v1846_v47 }
 0x505   : > { %1882 = vmatprep.subr.mxu0 %v2673_v4 }
 0x506   : > { %1883 = vmatpush1.msra.mxu0 %v1845_v48 }
 0x507   : > { %1884 = vmatprep.subr.mxu0 %v2673_v4 }
 0x508   : > { %1885 = vmatpush1.msra.mxu0 %v1844_v49 }
 0x509   : > { %1886 = vmatprep.subr.mxu0 %v2673_v4 }
 0x50a   : > { %1887 = vmatpush1.msra.mxu0 %v1843_v52 }
 0x50b   : > { %1888 = vmatprep.subr.mxu0 %v2673_v4 }
 0x50c   : > { %1889 = vmatpush1.msra.mxu0 %v1842_v54 }
 0x50d   : > { %1890 = vmatprep.subr.mxu0 %v2673_v4 }
 0x50e   : > { %1891 = vmatpush1.msra.mxu0 %v1841_v57 }
 0x50f   : > { %1892 = vmatprep.subr.mxu0 %v2673_v4 }
 0x510   : > { %1893 = vmatpush1.msra.mxu0 %v1840_v59 }
 0x511   : > { %1894 = vmatprep.subr.mxu0 %v2673_v4 }
 0x512   : > { %1895 = vmatpush1.msra.mxu0 %v1839_v0 }
 0x513   : > { %1896 = vmatprep.subr.mxu0 %v2673_v4 }
 0x514   : > { %1897 = vmatpush1.msra.mxu0 %v1838_v17 }
 0x515   : > { %1898 = vmatprep.subr.mxu0 %v2673_v4 }
 0x516   : > { %1899 = vmatpush1.msra.mxu0 %v1837_v1 }
 0x517   : > { %1900 = vmatprep.subr.mxu0 %v2673_v4 }
 0x518   : > { %1901 = vmatpush1.msra.mxu0 %v1836_v2 }
 0x519   : > { %1902 = vmatprep.subr.mxu0 %v2673_v4 }
 0x51a   : > { %1903 = vmatpush1.msra.mxu0 %v1835_v10 }
 0x51b   : > { %1904 = vmatprep.subr.mxu0 %v2673_v4 }
 0x51c   : > { %1905 = vmatpush1.msra.mxu0 %v1834_v5 }
 0x51d   : > { %1922 = vmatprep.subr.mxu0 %v2673_v4 }
 0x51e   : > { %1923 = vmatpush2.msra.mxu0 %v1857_v8  ;;  %v1852_v8 = vld [vmem:[%s4163_s3 + $0x90] sm:$0xff] }
 0x51f   : > { %1924 = vmatprep.subr.mxu0 %v2673_v4 }
 0x520   : > { %1925 = vmatpush2.msra.mxu0 %v1856_v6  ;;  %v1851_v6 = vld [vmem:[%s4163_s3 + $0x88] sm:$0xff] }
 0x521   : > { %1926 = vmatprep.subr.mxu0 %v2673_v4 }
 0x522   : > { %1927 = vmatpush2.msra.mxu0 %v1855_v9  ;;  %v1850_v9 = vld [vmem:[%s4163_s3 + $0x80] sm:$0xff] }
 0x523   : > { %1928 = vmatprep.subr.mxu0 %v2673_v4 }
 0x524   : > { %1929 = vmatpush2.msra.mxu0 %v1854_v11 }
 0x525   : > { %1930 = vmatprep.subr.mxu0 %v2673_v4 }
 0x526   : > { %1931 = vmatpush2.msra.mxu0 %v1853_v12 }
 0x527   : > { %1932 = vmatprep.subr.mxu0 %v2673_v4 }
 0x528   : > { %1933 = vmatpush2.msra.mxu0 %v1852_v8 }
 0x529   : > { %1934 = vmatprep.subr.mxu0 %v2673_v4 }
 0x52a   : > { %1935 = vmatpush2.msra.mxu0 %v1851_v6 }
 0x52b   : > { %1936 = vmatprep.subr.mxu0 %v2673_v4 }
 0x52c   : > { %1937 = vmatpush2.msra.mxu0 %v1850_v9 }
 0x5b3   : > { %v1662_v20 = vpop.f32.mrf.mxu0 }
 0x5b4   : > { %v1685_v39 = vadd.f32 3.0, %v1662_v20 }
 0x5b5   : > { %v1664_v14 = vpop.f32.mrf.mxu0 }
 0x5b6   : > { %v1693_v15 = vmax.f32 %v1685_v39, 0.0  ;;  %v1686_v18 = vadd.f32 3.0, %v1664_v14 }
 0x5b8   : > { %v1701_v51 = vmin.f32 %v1693_v15, 6.0  ;;  %v1694_v53 = vmax.f32 %v1686_v18, 0.0 }
 0x5b9   : > { %v1668_v45 = vpop.f32.mrf.mxu0 }
 0x5ba   : > { %v1702_v16 = vmin.f32 %v1694_v53, 6.0  ;;  %v1687_v46 = vadd.f32 3.0, %v1668_v45  ;;  %v1709_v21 = vmul.f32 %v1701_v51, %v1662_v20 }
 0x5bb   : > { %v1670_v25 = vpop.f32.mrf.mxu0 }
 0x5bc   : > { %v1710_v23 = vmul.f32 %v1702_v16, %v1664_v14  ;;  %v1695_v3 = vmax.f32 %v1687_v46, 0.0  ;;  %v1688_v50 = vadd.f32 3.0, %v1670_v25  ;;  %v1717_v55 = vmul.f32 0.16666667, %v1709_v21 }
 0x5bd   : > { %v1674_v26 = vpop.f32.mrf.mxu0 }
 0x5be   : > { %v1718_v27 = vmul.f32 0.16666667, %v1710_v23  ;;  %v1703_v61 = vmin.f32 %v1695_v3, 6.0  ;;  %v1696_v56 = vmax.f32 %v1688_v50, 0.0  ;;  %v1689_v28 = vadd.f32 3.0, %v1674_v26 }
 0x5bf   : > { %v1676_v30 = vpop.f32.mrf.mxu0 }
 0x5c0   : > { %v1704_v63 = vmin.f32 %v1696_v56, 6.0  ;;  %v1697_v31 = vmax.f32 %v1689_v28, 0.0  ;;  %v1690_v32 = vadd.f32 3.0, %v1676_v30  ;;  %2525 = vmatprep.mubr.msk.f32.mxu1 %vm744_vm0, %v1718_v27  ;;  %v1711_v34 = vmul.f32 %v1703_v61, %v1668_v45 }
 0x5c1   : > { %v1680_v35 = vpop.f32.mrf.mxu0  ;;  %1802 = vmatmul.mubr.f32.vlgmr.msra.gmra.mxu1 %v1717_v55 }
 0x5c2   : > { %v1712_v37 = vmul.f32 %v1704_v63, %v1670_v25  ;;  %v1705_v33 = vmin.f32 %v1697_v31, 6.0  ;;  %v1698_v36 = vmax.f32 %v1690_v32, 0.0  ;;  %v1691_v62 = vadd.f32 3.0, %v1680_v35 }
 0x5c3   : > { %v1682_v41 = vpop.f32.mrf.mxu0  ;;  %v1719_v47 = vmul.f32 0.16666667, %v1711_v34 }
 0x5c4   : > { %v1720_v42 = vmul.f32 0.16666667, %v1712_v37  ;;  %v1706_v44 = vmin.f32 %v1698_v36, 6.0  ;;  %v1692_v7 = vadd.f32 3.0, %v1682_v41  ;;  %v1713_v48 = vmul.f32 %v1705_v33, %v1674_v26 }
 0x5c5   : > { %v1699_v49 = vmax.f32 %v1691_v62, 0.0 }
 0x5c6   : > { %v1714_v52 = vmul.f32 %v1706_v44, %v1676_v30  ;;  %v1700_v54 = vmax.f32 %v1692_v7, 0.0  ;;  %2526 = vmatprep.mubr.msk.f32.mxu1 %vm744_vm0, %v1720_v42  ;;  %v1721_v17 = vmul.f32 0.16666667, %v1713_v48 }
 0x5c7   : > { %v1707_v57 = vmin.f32 %v1699_v49, 6.0  ;;  %1808 = vmatmul.mubr.f32.gmra.mxu1 %v1719_v47 }
 0x5c8   : > { %v1722_v59 = vmul.f32 0.16666667, %v1714_v52  ;;  %v1708_v0 = vmin.f32 %v1700_v54, 6.0 }
 0x5c9   : > { %v1715_v1 = vmul.f32 %v1707_v57, %v1680_v35 }
 0x5ca   : > { %v1716_v2 = vmul.f32 %v1708_v0, %v1682_v41  ;;  %2527 = vmatprep.mubr.msk.f32.mxu1 %vm744_vm0, %v1722_v59 }
 0x5cb   : > { %1814 = vmatmul.mubr.f32.gmra.mxu1 %v1721_v17  ;;  %v1723_v5 = vmul.f32 0.16666667, %v1715_v1 }
 0x5cc   : > { %v1724_v10 = vmul.f32 0.16666667, %v1716_v2 }
 0x5ce   : > { %2528 = vmatprep.mubr.msk.f32.mxu1 %vm744_vm0, %v1724_v10 }
 0x5cf   : > { %1820 = vmatmul.mubr.f32.gmra.mxu1 %v1723_v5 }
 0x5d0   : > { %2587 = vmatprep.mubr.msk.f32.mxu1 %vm2674_vm3, %v2673_v4 }
 0x681   : > { %v1803_v11 = vpop.f32.mrf.mxu1 }
 0x682   : > { %v1826_v39 = vadd.f32 %v1803_v11, %v3533_v40 }
 0x683   : > { %v1805_v12 = vpop.f32.mrf.mxu1 }
 0x684   : > { %v1827_v20 = vadd.f32 %v1805_v12, %v3536_v13 }
 0x686   : > { %2529 = vmatprep.mubr.msk.f32.mxu0 %vm744_vm0, %v1827_v20 }
 0x687   : > { %v1809_v14 = vpop.f32.mrf.mxu1  ;;  %1939 = vmatmul.mubr.f32.vlgmr.msra.gmra.mxu0 %v1826_v39 }
 0x688   : > { %v1828_v51 = vadd.f32 %v1809_v14, %v3542_v19  ;;  %v1860_v19 = vsub.s32 5, %v2848_v38 }
 0x689   : > { %v1811_v15 = vpop.f32.mrf.mxu1 }
 0x68a   : > { %v1829_v18 = vadd.f32 %v1811_v15, %v3545_v43  ;;  %v1861_v25 = vrot.slane %v3863_v60, %v1860_v19 }
 0x68b   : > { %v1815_v53 = vpop.f32.mrf.mxu1 }
 0x68c   : > { %2530 = vmatprep.mubr.msk.f32.mxu0 %vm744_vm0, %v1829_v18  ;;  %v1830_v13 = vadd.f32 %v1815_v53, %v3549_v22 }
 0x68d   : > { %v1817_v45 = vpop.f32.mrf.mxu1  ;;  %1944 = vmatmul.mubr.f32.gmra.mxu0 %v1828_v51 }
 0x68e   : > { %v1831_v16 = vadd.f32 %v1817_v45, %v3554_v24 }
 0x68f   : > { %v1821_v46 = vpop.f32.mrf.mxu1 }
 0x690   : > { %2531 = vmatprep.mubr.msk.f32.mxu0 %vm744_vm0, %v1831_v16  ;;  %v1832_v43 = vadd.f32 %v1821_v46, %v3558_v58 }
 0x691   : > { %v1823_v40 = vpop.f32.mrf.mxu1  ;;  %1949 = vmatmul.mubr.f32.gmra.mxu0 %v1830_v13 }
 0x692   : > { %v1833_v21 = vadd.f32 %v1823_v40, %v3563_v29 }
 0x694   : > { %2532 = vmatprep.mubr.msk.f32.mxu0 %vm744_vm0, %v1833_v21 }
 0x695   : > { %1954 = vmatmul.mubr.f32.gmra.mxu0 %v1832_v43 }
 0x747   : > { %v1940_v23 = vpop.f32.mrf.mxu0 }
 0x748   : > { %v4055_v24 = vadd.f32 %v1940_v23, %v1861_v25 }
 0x749   : > { %v1942_v22 = vpop.f32.mrf.mxu0 }
 0x74a   : > { %v1960_v3 = vsel %vm1959_vm2, %v4055_v24, 0.0 }
 0x74b   : > { %1961 = vadd.xlane.f32.xlu0 %v1960_v3 }
 0x74d   : > { %v1945_v50 = vpop.f32.mrf.mxu0 }
 0x74e   : > { %v4059_v29 = vadd.f32 %v1945_v50, %v1861_v25 }
 0x74f   : > { %v1947_v58 = vpop.f32.mrf.mxu0 }
 0x750   : > { %v1963_v26 = vsel %vm1959_vm2, %v4059_v29, 0.0 }
 0x751   : > { %v1950_v27 = vpop.f32.mrf.mxu0  ;;  %1964 = vadd.xlane.f32.xlu1 %v1963_v26  ;;  %v2031_v26 = vld [vmem:[%s4165_s5 + $0x18] sm:$0xff] }
 0x752   : > { %v4063_v61 = vadd.f32 %v1950_v27, %v1861_v25  ;;  %v2030_v27 = vld [vmem:[%s4165_s5 + $0x10] sm:$0xff] }
 0x753   : > { %v1952_v56 = vpop.f32.mrf.mxu0 }
 0x754   : > { %v1966_v28 = vsel %vm1959_vm2, %v4063_v61, 0.0 }
 0x755   : > { %1967 = vadd.xlane.f32.xlu0 %v1966_v28  ;;  %v1955_v55 = vpop.f32.mrf.mxu0 }
 0x756   : > { %v4067_v30 = vadd.f32 %v1955_v55, %v1861_v25 }
 0x757   : > { %v1957_v63 = vpop.f32.mrf.mxu0 }
 0x758   : > { %v1969_v31 = vsel %vm1959_vm2, %v4067_v30, 0.0  ;;  %v2536_v63 = vld [vmem:[%s4165_s5 + $0x38] sm:$0xff] }
 0x759   : > { %1970 = vadd.xlane.f32.xlu1 %v1969_v31  ;;  %v2029_v31 = vld [vmem:[%s4165_s5 + $0x8] sm:$0xff] }
 0x7d4   : > { %v1962_v32 = vpop.xlane.xlu0 %1961 }
 0x7d5   : > { %v1973_v33 = vmul.f32 0.083333336, %v1962_v32 }
 0x7da   : > { %v1965_v34 = vpop.xlane.xlu1 %1964 }
 0x7db   : > { %v1974_v35 = vmul.f32 0.083333336, %v1965_v34 }
 0x7dd   : > { %v1977_v62 = vadd.f32 %v1974_v35, %v1973_v33  ;;  %v2028_v33 = vld [vmem:[%s4165_s5] sm:$0xff] }
 0x7de   : > { %v1968_v37 = vpop.xlane.xlu0 %1967 }
 0x7df   : > { %v1975_v36 = vmul.f32 0.083333336, %v1968_v37  ;;  %v2535_v37 = vld [vmem:[%s4165_s5 + $0x30] sm:$0xff] }
 0x7e1   : > { %v1978_v42 = vadd.f32 %v1977_v62, %v1975_v36 }
 0x7e2   : > { %v1971_v41 = vpop.xlane.xlu1 %1970 }
 0x7e3   : > { %v1976_v44 = vmul.f32 0.083333336, %v1971_v41  ;;  %v2534_v41 = vld [vmem:[%s4165_s5 + $0x28] sm:$0xff] }
 0x7e5   : > { %v1979_v7 = vadd.f32 %v1978_v42, %v1976_v44 }
 0x7e7   : > { %v1980_v47 = vrot.slane %v1979_v7, 4 }
 0x7e9   : > { %v1981_v48 = vadd.f32 %v1980_v47, %v1979_v7  ;;  %v2533_v7 = vld [vmem:[%s4165_s5 + $0x20] sm:$0xff] }
 0x7eb   : > { %v1982_v49 = vrot.slane %v1981_v48, 2 }
 0x7ed   : > { %v1983_v52 = vadd.f32 %v1982_v49, %v1981_v48  ;;  %v2045_v49 = vld [vmem:[%s4166_s6] sm:$0xf] }
 0x7ef   : > { %v1984_v54 = vrot.slane %v1983_v52, 1 }
 0x7f1   : > { %v1985_v57 = vadd.f32 %v1984_v54, %v1983_v52  ;;  %v2125_v52 = vld [vmem:[%s4167_s7] sm:$0xff]  ;;  %v340_v54 = vld [vmem:[%s4168_s8 + $0x8] sm:$0xf] }
 0x7f3   : > { %v1987_v59 = vmul.f32 0.03125, %v1985_v57  ;;  %v339_v57 = vld [vmem:[%s4168_s8] sm:$0xff] }
 0x7f5   : > { %v1989_v0 = vsub.f32 %v4059_v29, %v1987_v59  ;;  %v1988_v17 = vsub.f32 %v4055_v24, %v1987_v59  ;;  %v1991_v1 = vsub.f32 %v4067_v30, %v1987_v59  ;;  %v1990_v2 = vsub.f32 %v4063_v61, %v1987_v59 }
 0x7f7   : > { %v1993_v10 = vmul.f32 %v1989_v0, %v1989_v0  ;;  %v1992_v5 = vmul.f32 %v1988_v17, %v1988_v17  ;;  %v1995_v9 = vmul.f32 %v1991_v1, %v1991_v1  ;;  %v1994_v11 = vmul.f32 %v1990_v2, %v1990_v2 }
 0x7f9   : > { %v1999_v8 = vsel %vm1959_vm2, %v1993_v10, 0.0  ;;  %v1996_v6 = vsel %vm1959_vm2, %v1992_v5, 0.0  ;;  %v2005_v12 = vsel %vm1959_vm2, %v1995_v9, 0.0  ;;  %v2002_v20 = vsel %vm1959_vm2, %v1994_v11, 0.0  ;;  %v2126_v5 = vld [vmem:[%s4167_s7 + $0x8] sm:$0xff]  ;;  %v2128_v9 = vld [vmem:[%s4167_s7 + $0x18] sm:$0xff] }
 0x7fa   : > { %2000 = vadd.xlane.f32.xlu1 %v1999_v8  ;;  %1997 = vadd.xlane.f32.xlu0 %v1996_v6  ;;  %v2127_v6 = vld [vmem:[%s4167_s7 + $0x10] sm:$0xff] }
 0x7fe   : > { %2006 = vadd.xlane.f32.xlu1 %v2005_v12  ;;  %2003 = vadd.xlane.f32.xlu0 %v2002_v20 }
 0x80f   : > { %2233 = vrot.lane.b32.xlu1 %v339_v57, %s2675_s18 }
 0x814   : > { %2235 = vrot.lane.b32.xlu0 %v340_v54, %s2675_s18 }
 0x883   : > { %v2001_v39 = vpop.xlane.xlu1 %2000  ;;  %v1998_v14 = vpop.xlane.xlu0 %1997 }
 0x884   : > { %v2009_v15 = vmul.f32 0.083333336, %v2001_v39  ;;  %v2008_v18 = vmul.f32 0.083333336, %v1998_v14 }
 0x886   : > { %v2012_v45 = vadd.f32 %v2009_v15, %v2008_v18 }
 0x887   : > { %v2007_v51 = vpop.xlane.xlu1 %2006  ;;  %v2004_v53 = vpop.xlane.xlu0 %2003 }
 0x888   : > { %v2010_v16 = vmul.f32 0.083333336, %v2004_v53  ;;  %v2011_v13 = vmul.f32 0.083333336, %v2007_v51  ;;  %v2438_v51 = vsub.s32 6, %v2848_v38 }
 0x88a   : > { %v2013_v46 = vadd.f32 %v2012_v45, %v2010_v16  ;;  %v2439_v16 = vrot.slane %v3863_v60, %v2438_v51 }
 0x88b   : > { %v2236_v8 = vpop.permute.xlu0 %2235  ;;  %v2234_v11 = vpop.permute.xlu1 %2233 }
 0x88c   : > { %v2014_v40 = vadd.f32 %v2013_v46, %v2011_v13 }
 0x88e   : > { %v2015_v21 = vrot.slane %v2014_v40, 4 }
 0x890   : > { %v2016_v43 = vadd.f32 %v2015_v21, %v2014_v40 }
 0x892   : > { %v2017_v19 = vrot.slane %v2016_v43, 2 }
 0x894   : > { %v2018_v25 = vadd.f32 %v2017_v19, %v2016_v43 }
 0x896   : > { %v2019_v23 = vrot.slane %v2018_v25, 1 }
 0x898   : > { %v2020_v22 = vadd.f32 %v2019_v23, %v2018_v25 }
 0x89a   : > { %v2021_v3 = vmul.f32 0.03125, %v2020_v22 }
 0x89c   : > { %v2022_v50 = vadd.f32 1e-05, %v2021_v3 }
 0x89e   : > { %2661 = vrsqrt.f32 %v2022_v50 }
 0x8ab   : > { %v2662_v58 = vpop.eup %2661 }
 0x8ac   : > { %v2027_v56 = vmul.f32 %v2662_v58, %v1991_v1  ;;  %v2026_v28 = vmul.f32 %v2662_v58, %v1990_v2  ;;  %v2025_v55 = vmul.f32 %v2662_v58, %v1989_v0  ;;  %v2024_v35 = vmul.f32 %v2662_v58, %v1988_v17 }
 0x8ae   : > { %v2035_v32 = vmul.f32 %v2031_v26, %v2027_v56  ;;  %v2034_v34 = vmul.f32 %v2030_v27, %v2026_v28  ;;  %v2033_v62 = vmul.f32 %v2029_v31, %v2025_v55  ;;  %v2032_v44 = vmul.f32 %v2028_v33, %v2024_v35 }
 0x8b0   : > { %v2044_v36 = vadd.f32 %v2536_v63, %v2035_v32  ;;  %v2043_v42 = vadd.f32 %v2535_v37, %v2034_v34  ;;  %v2042_v47 = vadd.f32 %v2534_v41, %v2033_v62  ;;  %v2041_v48 = vadd.f32 %v2533_v7, %v2032_v44 }
 0x8b2   : > { %2580 = vmatpush3.msra.mxu1 %v2044_v36 }
 0x8b3   : > { %2581 = vmatprep.subr.mxu1 %v2673_v4 }
 0x8b4   : > { %2582 = vmatpush3.msra.mxu1 %v2043_v42 }
 0x8b5   : > { %2583 = vmatprep.subr.mxu1 %v2673_v4 }
 0x8b6   : > { %2584 = vmatpush3.msra.mxu1 %v2042_v47 }
 0x8b7   : > { %2585 = vmatprep.subr.mxu1 %v2673_v4 }
 0x8b8   : > { %2586 = vmatpush3.msra.mxu1 %v2041_v48 }
 0x8b9   : > { %2588 = vmatmul.mubr.msk.f32.vlgmr.msra.gmra.mxu1 %vm2046_vm4, %v2045_v49 }
 0x8ba   : > { %2592 = vmatprep.mubr.msk.f32.mxu1 %vm2129_vm5, %v2125_v52 }
 0x979   : > { %v2116_v4 = vpop.f32.mrf.mxu1 }
 0x97a   : > { %v2120_v59 = vadd.f32 3.0, %v2116_v4 }
 0x97b   : > { %v2589_v0 = vpop.f32.mrf.mxu1 }
 0x97c   : > { %v2121_v17 = vmax.f32 %v2120_v59, 0.0 }
 0x97e   : > { %v2122_v1 = vmin.f32 %v2121_v17, 6.0 }
 0x980   : > { %v2123_v2 = vmul.f32 %v2122_v1, %v2116_v4 }
 0x982   : > { %v2124_v10 = vmul.f32 0.16666667, %v2123_v2 }
 0x984   : > { %2590 = vmatprep.subr.msk.mxu1 %vm2142_vm6, %v2124_v10 }
 0x985   : > { %2591 = vmatpush3.msk.msra.mxu1 %vm2142_vm6, %v2124_v10 }
 0x986   : > { %2593 = vmatmul.mubr.msk.f32.vlgmr.msra.gmra.mxu1 %vm2129_vm5, %v2126_v5  ;;  %2598 = vmatprep.subr.msk.mxu1 %vm2142_vm6, %v2236_v8 }
 0x987   : > { %2595 = vmatprep.mubr.msk.f32.mxu1 %vm2129_vm5, %v2127_v6  ;;  %2599 = vmatpush3.msk.msra.mxu1 %vm2142_vm6, %v2236_v8 }
 0x988   : > { %2600 = vmatprep.subr.mxu1 %v2234_v11 }
 0x989   : > { %2601 = vmatpush3.msra.mxu1 %v2234_v11 }
 0x98a   : > { %2596 = vmatmul.mubr.msk.f32.gmra.mxu1 %vm2129_vm5, %v2128_v9  ;;  %2608 = vmatprep.subr.msk.mxu1 %vm2142_vm6, %v340_v54 }
 0xa46   : > { %v2594_v12 = vpop.f32.mrf.mxu1 }
 0xa48   : > { %v2212_v20 = vpop.f32.mrf.mxu1 }
 0xa49   : > { %2602 = vmatprep.mubr.msk.f32.mxu1 %vm1959_vm2, %v2212_v20 }
 0xa4a   : > { %v2597_v39 = vpop.f32.mrf.mxu1  ;;  %2603 = vmatmul.mubr.msk.f32.vlgmr.msra.gmra.mxu1 %vm1959_vm2, %v2594_v12 }
 0xa4b   : > { %2609 = vmatpush3.msk.msra.mxu1 %vm2142_vm6, %v340_v54 }
 0xa4c   : > { %v2222_v14 = vpop.f32.mrf.mxu1  ;;  %2610 = vmatprep.subr.mxu1 %v339_v57 }
 0xa4d   : > { %2605 = vmatprep.mubr.msk.f32.mxu1 %vm1959_vm2, %v2222_v14  ;;  %2611 = vmatpush3.msra.mxu1 %v339_v57 }
 0xa4e   : > { %2606 = vmatmul.mubr.msk.f32.gmra.mxu1 %vm1959_vm2, %v2597_v39 }
 0xa4f   : > { %2612 = vmatprep.mubr.msk.f32.mxu1 %vm1959_vm2, %v4055_v24 }
 0xa52   : > { %2613 = vmatmul.mubr.msk.f32.vlgmr.msra.gmra.mxu1 %vm1959_vm2, %v4059_v29 }
 0xa53   : > { %2615 = vmatprep.mubr.msk.f32.mxu1 %vm1959_vm2, %v4063_v61 }
 0xa56   : > { %2616 = vmatmul.mubr.msk.f32.gmra.mxu1 %vm1959_vm2, %v4067_v30 }
 0xb0a   : > { %v2604_v15 = vpop.f32.mrf.mxu1 }
 0xb0c   : > { %v2318_v18 = vpop.f32.mrf.mxu1 }
 0xb0e   : > { %v2607_v53 = vpop.f32.mrf.mxu1 }
 0xb10   : > { %v2328_v45 = vpop.f32.mrf.mxu1 }
 0xb12   : > { %v2614_v13 = vpop.f32.mrf.mxu1 }
 0xb13   : > { %v2423_v46 = vadd.f32 %v2614_v13, %v2604_v15 }
 0xb14   : > { %v2417_v24 = vpop.f32.mrf.mxu1 }
 0xb15   : > { %v2441_v29 = vadd.f32 %v2439_v16, %v2423_v46  ;;  %v2418_v61 = vadd.f32 %v2417_v24, %v2318_v18 }
 0xb16   : > { %v2617_v30 = vpop.f32.mrf.mxu1 }
 0xb17   : > { %2446 = vst.msk [vmem:[%s332_s28 + $0x8] sm:$0xff] %vm2444_vm7, %v2441_v29  ;;  %v2440_v40 = vadd.f32 %v2439_v16, %v2418_v61  ;;  %v2433_v21 = vadd.f32 %v2617_v30, %v2607_v53 }
 0xb18   : > { %v2427_v38 = vpop.f32.mrf.mxu1 }
 0xb19   : > { %2445 = vst.msk [vmem:[%s332_s28] sm:$0xff] %vm2444_vm7, %v2440_v40  ;;  %v2443_v43 = vadd.f32 %v2439_v16, %v2433_v21  ;;  %v2428_v19 = vadd.f32 %v2427_v38, %v2328_v45 }
 0xb1b   : > { %2448 = vst.msk [vmem:[%s332_s28 + $0x18] sm:$0xff] %vm2444_vm7, %v2443_v43  ;;  %v2442_v60 = vadd.f32 %v2439_v16, %v2428_v19 }
 0xb1d   : > { %2447 = vst.msk [vmem:[%s332_s28 + $0x10] sm:$0xff] %vm2444_vm7, %v2442_v60 }
 0xb1e PF: > { %s19_s30 = sadd.s32 1, %s2671_s30  }
 0xb1f   : > { %p16_p4 = scmp.ge.s32.totalorder %s19_s30, 6  }
 0xb21   :  { %18 = sbr.rel (!%p16_p4) target bundleno = 1 (0x1), region = 87 }

</bundles_post_ra>
